<compile_context>
chip_gen: v6e
topology: v6e:2x2x1
jax: 0.10.0
libtpu: 0.0.40
codegen_flags: <defaults>
</compile_context>

<pallas_src>
import jax
import jax.numpy as jnp
from jax.experimental import pallas as pl
from jax.experimental.pallas import tpu as pltpu


def fusion_kernel(img_ref, text_ref, dummy_ref, wrep_ref, apack_ref, w2pack_ref,
                  out_ref, acc_ref):
    """Grid axis 0 tiles the folded contraction dim K = C*H*W (reduction)."""
    k = pl.program_id(0)

    @pl.when(k == 0)
    def _():
        acc_ref[...] = jnp.zeros_like(acc_ref)

    # AdaptiveAvgPool2d + img_linear folded into one bf16 MXU matmul per K tile.
    acc_ref[...] += jnp.dot(img_ref[...].astype(jnp.bfloat16), wrep_ref[...],
                            preferred_element_type=jnp.float32)

    # Epilogue only on the final K tile: fused BN(eval) + concat + Linear1 +
    # ReLU + Linear2 on tiny (B, D)-sized operands.
    @pl.when(k == pl.num_programs(0) - 1)
    def _():
        E = text_ref.shape[1]
        D = apack_ref.shape[1]

        z = acc_ref[...].astype(jnp.bfloat16)                  # condensed_img (B, E)
        a_img = apack_ref[0:E, :]                              # folded BN + W1 blocks
        a_txt = apack_ref[E:2 * E, :]
        a_dum = apack_ref[2 * E:3 * E, :]
        c = apack_ref[3 * E:3 * E + 1, :].astype(jnp.float32)  # folded bias (1, D)

        h_pre = (jnp.dot(z, a_img, preferred_element_type=jnp.float32)
                 + jnp.dot(text_ref[...].astype(jnp.bfloat16), a_txt,
                           preferred_element_type=jnp.float32)
                 + jnp.dot(dummy_ref[...].astype(jnp.bfloat16), a_dum,
                           preferred_element_type=jnp.float32)
                 + c)
        h = jnp.maximum(h_pre, 0.0)          # ReLU; Dropout = identity in eval mode

        w2 = w2pack_ref[0:D, :]
        b2 = w2pack_ref[D:D + 1, :].astype(jnp.float32)
        out = jnp.dot(h.astype(jnp.bfloat16), w2,
                      preferred_element_type=jnp.float32) + b2
        out_ref[...] = out.astype(out_ref.dtype)


def _choose_tk(K, B, E, vmem_budget=32 * 1024 * 1024):
    """Lane-dense K tile that divides K and keeps double-buffered blocks in VMEM."""
    e_pad = ((E + 127) // 128) * 128
    tk = K
    if K > 8192:
        for cand in (8192, 4096, 2048, 1024, 512, 256, 128):
            if K % cand == 0:
                tk = cand
                break

    def est(t):  # img f32 tile + lane-padded W_rep bf16 tile, double-buffered
        return 2 * (max(B, 8) * t * 4 + t * e_pad * 2)

    while tk > 128 and est(tk) > vmem_budget and K % (tk // 2) == 0:
        tk //= 2
    return tk


def fusion_network(img_nchw, text, dummy, kparams):
    """Wrapper: free reshape of NCHW + single pallas_call with a K-reduction grid."""
    B, C, H, W = img_nchw.shape
    K = C * H * W
    img_flat = img_nchw.reshape(B, K)        # free reshape of contiguous NCHW

    E = text.shape[1]
    D = kparams["a_pack"].shape[1]
    hidden = kparams["w2_pack"].shape[1]
    TK = _choose_tk(K, B, E)
    assert K % TK == 0

    grid_spec = pltpu.PrefetchScalarGridSpec(
        num_scalar_prefetch=0,
        grid=(K // TK,),
        in_specs=[
            pl.BlockSpec((B, TK), lambda k: (0, k)),           # image K-tile
            pl.BlockSpec((B, E), lambda k: (0, 0)),            # text   (resident)
            pl.BlockSpec((B, E), lambda k: (0, 0)),            # dummy  (resident)
            pl.BlockSpec((TK, E), lambda k: (k, 0)),           # W_rep K-tile
            pl.BlockSpec((3 * E + 1, D), lambda k: (0, 0)),    # folded BN+W1 + bias
            pl.BlockSpec((D + 1, hidden), lambda k: (0, 0)),   # W2 + b2
        ],
        out_specs=pl.BlockSpec((B, hidden), lambda k: (0, 0)),
        scratch_shapes=[pltpu.VMEM((B, E), jnp.float32)],      # condensed_img acc
    )

    return pl.pallas_call(
        fusion_kernel,
        out_shape=jax.ShapeDtypeStruct((B, hidden), jnp.float32),
        grid_spec=grid_spec,
        compiler_params=pltpu.CompilerParams(
            dimension_semantics=("arbitrary",),   # K is a reduction axis
        ),
    )(img_flat, text, dummy,
      kparams["w_rep"], kparams["a_pack"], kparams["w2_pack"])


def make_params(key, embedding_dim, hidden_dim, use_img=1, use_text=1):
    """Deterministic synthetic parameters mirroring FusionNetwork.__init__ shapes."""
    D = embedding_dim + embedding_dim * use_img + embedding_dim * use_text
    ks = jax.random.split(key, 8)

    def uinit(k, shape, fan_in):
        bound = 1.0 / jnp.sqrt(fan_in)
        return jax.random.uniform(k, shape, jnp.float32, -bound, bound)

    return {
        # img_linear: Linear(2048, E)  -> W^T (2048, E), bias (1, E)
        "w_img_t": uinit(ks[0], (2048, embedding_dim), 2048),
        "b_img": uinit(ks[1], (1, embedding_dim), 2048),
        # BatchNorm1d(D): running stats + affine params (eval mode)
        "bn_gamma": jax.random.uniform(ks[2], (1, D), jnp.float32, 0.5, 1.5),
        "bn_beta": 0.1 * jax.random.normal(ks[3], (1, D), jnp.float32),
        "bn_mean": jnp.zeros((1, D), jnp.float32),
        "bn_var": jnp.ones((1, D), jnp.float32),
        # Linear(D, D, bias=False) -> W1^T (D, D)
        "w1_t": uinit(ks[4], (D, D), D),
        # Linear(D, hidden) -> W2^T (D, hidden), bias (1, hidden)
        "w2_t": uinit(ks[5], (D, hidden_dim), D),
        "b2": uinit(ks[6], (1, hidden_dim), D),
    }


def prepare_kernel_params(raw, H, W, dtype=jnp.bfloat16):
    """One-time host-side folding of pool + img_linear + BN(eval) + Linear1.

    Assumes use_img = use_text = 1 (concat order [condensed_img, text, dummy]).
    """
    HW = H * W
    E = raw["w_img_t"].shape[1]
    D = raw["w1_t"].shape[0]
    eps = 1e-5

    # BN(eval) as per-feature affine: bn(x) = x * s + t
    s = raw["bn_gamma"] * jax.lax.rsqrt(raw["bn_var"] + eps)      # (1, D)
    t = raw["bn_beta"] - raw["bn_mean"] * s                       # (1, D)
    w1s = raw["w1_t"] * s.reshape(D, 1)                           # row-scaled W1
    a_img, a_txt, a_dum = w1s[0:E], w1s[E:2 * E], w1s[2 * E:3 * E]
    c = raw["b_img"] @ a_img + t @ raw["w1_t"]                    # folded bias (1, D)

    # Pooling folded into img_linear on the contiguous (B, C*HW) layout:
    # W_rep[c*HW + hw, e] = W_img[c, e] / HW
    w_rep = jnp.repeat(raw["w_img_t"], HW, axis=0) / HW           # (C*HW, E)

    return {
        "w_rep": w_rep.astype(dtype),
        "a_pack": jnp.concatenate([a_img, a_txt, a_dum, c], axis=0).astype(dtype),
        "w2_pack": jnp.concatenate([raw["w2_t"], raw["b2"]], axis=0).astype(dtype),
    }


def fusion_network_ref(img_nchw, text, dummy, raw):
    """Pure-JAX reference (unfolded path) for correctness checking."""
    pooled = jnp.mean(img_nchw, axis=(2, 3))                      # (B, C)
    condensed = pooled @ raw["w_img_t"] + raw["b_img"]
    concat = jnp.concatenate([condensed, text, dummy], axis=-1)
    x = ((concat - raw["bn_mean"]) * jax.lax.rsqrt(raw["bn_var"] + 1e-5)
         * raw["bn_gamma"] + raw["bn_beta"])
    h = jnp.maximum(x @ raw["w1_t"], 0.0)
    return h @ raw["w2_t"] + raw["b2"]


if __name__ == "__main__":
    embedding_dim = 32
    hidden_dim = 32
    use_img, use_text = 1, 1          # folding assumes [img, text, dummy] concat
    B, C, H, W = 8, 2048, 4, 4        # C=2048 is fixed by img_linear's input dim

    key = jax.random.PRNGKey(0)
    k_img, k_txt, k_dum, k_par = jax.random.split(key, 4)

    img_encoding = jax.random.normal(k_img, (B, C, H, W), jnp.float32)
    text_encoding = jax.random.normal(k_txt, (B, embedding_dim), jnp.float32)
    dummy_encoding = jax.random.normal(k_dum, (B, embedding_dim), jnp.float32)

    raw = make_params(k_par, embedding_dim, hidden_dim, use_img, use_text)
    kparams = prepare_kernel_params(raw, H, W)

    out = fusion_network(img_encoding, text_encoding, dummy_encoding, kparams)
    out = jax.block_until_ready(out)

    ref = fusion_network_ref(img_encoding, text_encoding, dummy_encoding, raw)
    assert out.shape == (B, hidden_dim)
    assert jnp.allclose(out, ref, rtol=2e-2, atol=2e-2), "mismatch vs reference"

    print("KERNEL_OK")
</pallas_src>

<mosaic_0001>
module attributes {stable_mosaic.version = 11 : i64} {
  func.func @fusion_kernel(%arg0: i32, %arg1: memref<8x8192xf32, #tpu.memory_space<vmem>>, %arg2: memref<8x32xf32, #tpu.memory_space<vmem>>, %arg3: memref<8x32xf32, #tpu.memory_space<vmem>>, %arg4: memref<8192x32xbf16, #tpu.memory_space<vmem>>, %arg5: memref<97x96xbf16, #tpu.memory_space<vmem>>, %arg6: memref<97x32xbf16, #tpu.memory_space<vmem>>, %arg7: memref<8x32xf32, #tpu.memory_space<vmem>>, %arg8: memref<8x32xf32, #tpu.memory_space<vmem>>) attributes {dimension_semantics = [#tpu.dimension_semantics<arbitrary>], iteration_bounds = array<i64: 4>, scalar_prefetch = 0 : i64, scratch_operands = 1 : i64, tpu.core_type = #tpu.core_type<tc>, window_params = [{transform_indices = @transform_0, window_bounds = array<i64: 8, 8192>}, {pipeline_mode = #tpu.pipeline_mode<synchronous>, transform_indices = @transform_1, window_bounds = array<i64: 8, 32>}, {pipeline_mode = #tpu.pipeline_mode<synchronous>, transform_indices = @transform_2, window_bounds = array<i64: 8, 32>}, {transform_indices = @transform_3, window_bounds = array<i64: 8192, 32>}, {pipeline_mode = #tpu.pipeline_mode<synchronous>, transform_indices = @transform_4, window_bounds = array<i64: 97, 96>}, {pipeline_mode = #tpu.pipeline_mode<synchronous>, transform_indices = @transform_5, window_bounds = array<i64: 97, 32>}, {pipeline_mode = #tpu.pipeline_mode<synchronous>, transform_indices = @transform_6, window_bounds = array<i64: 8, 32>}]} {
    %c0_i32 = arith.constant 0 : i32
    %0 = arith.cmpi eq, %arg0, %c0_i32 : i32
    %1 = arith.extui %0 : i1 to i32
    %c0_i32_0 = arith.constant 0 : i32
    %2 = arith.cmpi ne, %1, %c0_i32_0 : i32
    scf.if %2 {
      %cst_9 = arith.constant 0.000000e+00 : f32
      %13 = vector.broadcast %cst_9 : f32 to vector<8x32xf32>
      %c0_10 = arith.constant 0 : index
      %c0_11 = arith.constant 0 : index
      %14 = vector.load %arg8[%c0_10, %c0_11] : memref<8x32xf32, #tpu.memory_space<vmem>>, vector<8x32xf32>
      tpu.vector_store %arg8[%c0_10, %c0_11], %13 {strides = array<i32>} : memref<8x32xf32, #tpu.memory_space<vmem>>, vector<8x32xf32>,
    } else {
    }
    %c0 = arith.constant 0 : index
    %c0_1 = arith.constant 0 : index
    %3 = vector.load %arg8[%c0, %c0_1] : memref<8x32xf32, #tpu.memory_space<vmem>>, vector<8x32xf32>
    %c0_2 = arith.constant 0 : index
    %c0_3 = arith.constant 0 : index
    %4 = vector.load %arg1[%c0_2, %c0_3] : memref<8x8192xf32, #tpu.memory_space<vmem>>, vector<8x8192xf32>
    %5 = arith.truncf %4 : vector<8x8192xf32> to vector<8x8192xbf16>
    %c0_4 = arith.constant 0 : index
    %c0_5 = arith.constant 0 : index
    %6 = vector.load %arg4[%c0_4, %c0_5] : memref<8192x32xbf16, #tpu.memory_space<vmem>>, vector<8192x32xbf16>
    %cst = arith.constant dense<0.000000e+00> : vector<8x32xf32>
    %7 = tpu.matmul %5, %6, %cst {dimension_numbers = #tpu.dot_dimension_numbers<[1], [0], [0], [1], [0, 0, 1, 1], [], []>} : vector<8x8192xbf16>, vector<8192x32xbf16>, vector<8x32xf32> -> vector<8x32xf32>
    %8 = arith.addf %3, %7 : vector<8x32xf32>
    %c0_6 = arith.constant 0 : index
    %c0_7 = arith.constant 0 : index
    %9 = vector.load %arg8[%c0_6, %c0_7] : memref<8x32xf32, #tpu.memory_space<vmem>>, vector<8x32xf32>
    tpu.vector_store %arg8[%c0_6, %c0_7], %8 {strides = array<i32>} : memref<8x32xf32, #tpu.memory_space<vmem>>, vector<8x32xf32>,
    %c3_i32 = arith.constant 3 : i32
    %10 = arith.cmpi eq, %arg0, %c3_i32 : i32
    %11 = arith.extui %10 : i1 to i32
    %c0_i32_8 = arith.constant 0 : i32
    %12 = arith.cmpi ne, %11, %c0_i32_8 : i32
    scf.if %12 {
      %c0_9 = arith.constant 0 : index
      %c0_10 = arith.constant 0 : index
      %13 = vector.load %arg8[%c0_9, %c0_10] : memref<8x32xf32, #tpu.memory_space<vmem>>, vector<8x32xf32>
      %14 = arith.truncf %13 : vector<8x32xf32> to vector<8x32xbf16>
      %c0_11 = arith.constant 0 : index
      %c0_12 = arith.constant 0 : index
      %15 = vector.load %arg5[%c0_11, %c0_12] : memref<97x96xbf16, #tpu.memory_space<vmem>>, vector<32x96xbf16>
      %c32 = arith.constant 32 : index
      %c0_13 = arith.constant 0 : index
      %16 = vector.load %arg5[%c32, %c0_13] : memref<97x96xbf16, #tpu.memory_space<vmem>>, vector<32x96xbf16>
      %c64 = arith.constant 64 : index
      %c0_14 = arith.constant 0 : index
      %17 = vector.load %arg5[%c64, %c0_14] : memref<97x96xbf16, #tpu.memory_space<vmem>>, vector<32x96xbf16>
      %c96 = arith.constant 96 : index
      %c0_15 = arith.constant 0 : index
      %18 = vector.load %arg5[%c96, %c0_15] : memref<97x96xbf16, #tpu.memory_space<vmem>>, vector<1x96xbf16>
      %19 = arith.extf %18 : vector<1x96xbf16> to vector<1x96xf32>
      %cst_16 = arith.constant dense<0.000000e+00> : vector<8x96xf32>
      %20 = tpu.matmul %14, %15, %cst_16 {dimension_numbers = #tpu.dot_dimension_numbers<[1], [0], [0], [1], [0, 0, 1, 1], [], []>} : vector<8x32xbf16>, vector<32x96xbf16>, vector<8x96xf32> -> vector<8x96xf32>
      %c0_17 = arith.constant 0 : index
      %c0_18 = arith.constant 0 : index
      %21 = vector.load %arg2[%c0_17, %c0_18] : memref<8x32xf32, #tpu.memory_space<vmem>>, vector<8x32xf32>
      %22 = arith.truncf %21 : vector<8x32xf32> to vector<8x32xbf16>
      %cst_19 = arith.constant dense<0.000000e+00> : vector<8x96xf32>
      %23 = tpu.matmul %22, %16, %cst_19 {dimension_numbers = #tpu.dot_dimension_numbers<[1], [0], [0], [1], [0, 0, 1, 1], [], []>} : vector<8x32xbf16>, vector<32x96xbf16>, vector<8x96xf32> -> vector<8x96xf32>
      %24 = arith.addf %20, %23 : vector<8x96xf32>
      %c0_20 = arith.constant 0 : index
      %c0_21 = arith.constant 0 : index
      %25 = vector.load %arg3[%c0_20, %c0_21] : memref<8x32xf32, #tpu.memory_space<vmem>>, vector<8x32xf32>
      %26 = arith.truncf %25 : vector<8x32xf32> to vector<8x32xbf16>
      %cst_22 = arith.constant dense<0.000000e+00> : vector<8x96xf32>
      %27 = tpu.matmul %26, %17, %cst_22 {dimension_numbers = #tpu.dot_dimension_numbers<[1], [0], [0], [1], [0, 0, 1, 1], [], []>} : vector<8x32xbf16>, vector<32x96xbf16>, vector<8x96xf32> -> vector<8x96xf32>
      %28 = arith.addf %24, %27 : vector<8x96xf32>
      %29 = vector.broadcast %19 : vector<1x96xf32> to vector<8x96xf32>
      %30 = arith.addf %28, %29 : vector<8x96xf32>
      %cst_23 = arith.constant 0.000000e+00 : f32
      %31 = vector.broadcast %cst_23 : f32 to vector<8x96xf32>
      %32 = arith.maximumf %30, %31 : vector<8x96xf32>
      %c0_24 = arith.constant 0 : index
      %c0_25 = arith.constant 0 : index
      %33 = vector.load %arg6[%c0_24, %c0_25] : memref<97x32xbf16, #tpu.memory_space<vmem>>, vector<96x32xbf16>
      %c96_26 = arith.constant 96 : index
      %c0_27 = arith.constant 0 : index
      %34 = vector.load %arg6[%c96_26, %c0_27] : memref<97x32xbf16, #tpu.memory_space<vmem>>, vector<1x32xbf16>
      %35 = arith.extf %34 : vector<1x32xbf16> to vector<1x32xf32>
      %36 = arith.truncf %32 : vector<8x96xf32> to vector<8x96xbf16>
      %cst_28 = arith.constant dense<0.000000e+00> : vector<8x32xf32>
      %37 = tpu.matmul %36, %33, %cst_28 {dimension_numbers = #tpu.dot_dimension_numbers<[1], [0], [0], [1], [0, 0, 1, 1], [], []>} : vector<8x96xbf16>, vector<96x32xbf16>, vector<8x32xf32> -> vector<8x32xf32>
      %38 = vector.broadcast %35 : vector<1x32xf32> to vector<8x32xf32>
      %39 = arith.addf %37, %38 : vector<8x32xf32>
      %c0_29 = arith.constant 0 : index
      %c0_30 = arith.constant 0 : index
      %40 = vector.load %arg7[%c0_29, %c0_30] : memref<8x32xf32, #tpu.memory_space<vmem>>, vector<8x32xf32>
      tpu.vector_store %arg7[%c0_29, %c0_30], %39 {strides = array<i32>} : memref<8x32xf32, #tpu.memory_space<vmem>>, vector<8x32xf32>,
    } else {
    }
    return
  }
  func.func @transform_0(%arg0: i32) -> (i32, i32) {
    %c0_i32 = arith.constant 0 : i32
    %c0_i32_0 = arith.constant 0 : i32
    return %c0_i32, %arg0 : i32, i32
  }
  func.func @transform_1(%arg0: i32) -> (i32, i32) {
    %c0_i32 = arith.constant 0 : i32
    %c0_i32_0 = arith.constant 0 : i32
    %c0_i32_1 = arith.constant 0 : i32
    return %c0_i32, %c0_i32_0 : i32, i32
  }
  func.func @transform_2(%arg0: i32) -> (i32, i32) {
    %c0_i32 = arith.constant 0 : i32
    %c0_i32_0 = arith.constant 0 : i32
    %c0_i32_1 = arith.constant 0 : i32
    return %c0_i32, %c0_i32_0 : i32, i32
  }
  func.func @transform_3(%arg0: i32) -> (i32, i32) {
    %c0_i32 = arith.constant 0 : i32
    %c0_i32_0 = arith.constant 0 : i32
    return %arg0, %c0_i32 : i32, i32
  }
  func.func @transform_4(%arg0: i32) -> (i32, i32) {
    %c0_i32 = arith.constant 0 : i32
    %c0_i32_0 = arith.constant 0 : i32
    %c0_i32_1 = arith.constant 0 : i32
    return %c0_i32, %c0_i32_0 : i32, i32
  }
  func.func @transform_5(%arg0: i32) -> (i32, i32) {
    %c0_i32 = arith.constant 0 : i32
    %c0_i32_0 = arith.constant 0 : i32
    %c0_i32_1 = arith.constant 0 : i32
    return %c0_i32, %c0_i32_0 : i32, i32
  }
  func.func @transform_6(%arg0: i32) -> (i32, i32) {
    %c0_i32 = arith.constant 0 : i32
    %c0_i32_0 = arith.constant 0 : i32
    %c0_i32_1 = arith.constant 0 : i32
    return %c0_i32, %c0_i32_0 : i32, i32
  }
}

</mosaic_0001>

<bundles_post_ra>
// kernel: tpu_custom_call.1
= control target key start
LH: loop header
LB: loop body
LE: loop exit
PB: predicated region body
PF: predicated region fallthrough
CT: control target
= control target key end

     0   :  { %11 = vsyncpa [#allocation4], 0  ;;  %s8050_s21 = smov 0   ;;  %s8749_s0 = inlined_call_operand.vmem [shape: f32[8,32768], index: 0, kind: input, shape index: {}]   ;;  %s8750_s1 = inlined_call_operand.vmem [shape: f32[8,32], index: 1, kind: input, shape index: {}]   ;;  %s8751_s2 = inlined_call_operand.vmem [shape: f32[8,32], index: 2, kind: input, shape index: {}]   ;;  %s8752_s3 = inlined_call_operand.vmem [shape: bf16[32768,32], index: 3, kind: input, shape index: {}]   ;;  %s8753_s4 = inlined_call_operand.vmem [shape: bf16[97,96], index: 4, kind: input, shape index: {}]   ;;  %s8754_s5 = inlined_call_operand.vmem [shape: bf16[97,32], index: 5, kind: input, shape index: {}]   ;;  %s8755_s6 = inlined_call_operand.hbm [shape: f32[8,32], index: 6, kind: output, shape index: {}]  }
   0x1 LB: > { %s8056_s22 = sadd.s32 4294967295, %s8009_s21   ;;  %p6134_p0 = scmp.ge.s32.totalorder %s8009_s21, 1  ;;  %s8009_s21 = sphi %s8050_s21, %s17_s21  }
   0x2   : > { %p220_p1 = scmp.lt.s32.totalorder %s8009_s21, 5 }
   0x4   : > { %p221_p2 = pnand %p6134_p0, %p220_p1 }
   0x5   : > { %s6135_s23 = sshll.u32 (!%p221_p2), %s8056_s22, 6  ;;  %s6137_s24 = sshll.u32 (!%p221_p2), %s8056_s22, 10 }
   0x6   : > { %224 = sbr.rel (%p221_p2) target bundleno = 1179 (0x49b), region = 44  ;;  %p251_p3 = scmp.lt.s32.totalorder (!%p221_p2), %s6135_s23, 255 }
   0x7   : > { %p257_p4 = scmp.lt.s32.totalorder (!%p221_p2), %s6137_s24, 4095  ;;  %p6139_p5 = scmp.ne.s32.totalorder (!%p221_p2), %s8056_s22, 0 }
   0xb   : > { %s8757_s23 = smov (!%p251_p3, %s6135_s23), 255  ;;  %s8759_s24 = smov (!%p257_p4, %s6137_s24), 4095 }
   0xc   : > { %s6136_s25 = sshll.u32 %s8757_s23, 3  ;;  %s6138_s29 = sshll.u32 %s8759_s24, 2 }
   0xd   : > { %s8065_s28 = scalar_lea.vmem %s8749_s0, %s6136_s25  ;;  %s8070_s8 = scalar_lea.vmem %s8752_s3, %s6138_s29 }
   0xe   : > { %266 = sbr.rel (%p6139_p5) target bundleno = 21 (0x15), region = 48 }
  0x13   : > { %vm267_vm0 = vcmask 261120   ;;  %v8011_v0 = vmov 0.0  }
  0x14   : > { %268 = vst.msk [vmem:[#allocation2] sm:$0xff] %vm267_vm0, %v8011_v0 }
  0x15 PF: > { %v7451_v1 = vld [vmem:[%s8070_s8 + $0x78] sm:$0xff]   ;;  %v7455_v5 = vld [vmem:[%s8070_s8 + $0x70] sm:$0xff]   ;;  %v7459_v9 = vld [vmem:[%s8070_s8 + $0x68] sm:$0xff]   ;;  %vm5775_vm1 = vcmask 261120   ;;  %p6652_p6 = scmp.ne.s32.totalorder %s8056_s22, 3 }
  0x16   : > { %v7452_v2 = vld [vmem:[%s8070_s8 + $0xf8] sm:$0xff]   ;;  %6673 = vmatprep.subr.bf16.mxu0 %v7451_v1  ;;  %v7456_v6 = vld [vmem:[%s8070_s8 + $0xf0] sm:$0xff]   ;;  %v7460_v10 = vld [vmem:[%s8070_s8 + $0xe8] sm:$0xff]  }
  0x17   : > { %v7453_v3 = vld [vmem:[%s8070_s8 + $0x38] sm:$0xff]   ;;  %6695 = vmatprep.subr.bf16.mxu1 %v7452_v2  ;;  %v7457_v7 = vld [vmem:[%s8070_s8 + $0x30] sm:$0xff]   ;;  %v7461_v11 = vld [vmem:[%s8070_s8 + $0x28] sm:$0xff]  }
  0x18   : > { %v7454_v4 = vld [vmem:[%s8070_s8 + $0xb8] sm:$0xff]   ;;  %6674 = vmatpush3.bf16.msra.mxu0 %v7453_v3  ;;  %v7458_v8 = vld [vmem:[%s8070_s8 + $0xb0] sm:$0xff]   ;;  %v7462_v12 = vld [vmem:[%s8070_s8 + $0xa8] sm:$0xff]  }
  0x19   : > { %6696 = vmatpush3.bf16.msra.mxu1 %v7454_v4  ;;  %6675 = vmatprep.subr.bf16.mxu0 %v7455_v5  ;;  %v7463_v13 = vld [vmem:[%s8070_s8 + $0x60] sm:$0xff]   ;;  %v7467_v17 = vld [vmem:[%s8070_s8 + $0x58] sm:$0xff]   ;;  %v7471_v21 = vld [vmem:[%s8070_s8 + $0x50] sm:$0xff]  }
  0x1a   : > { %6697 = vmatprep.subr.bf16.mxu1 %v7456_v6  ;;  %v7464_v14 = vld [vmem:[%s8070_s8 + $0xe0] sm:$0xff]   ;;  %v7468_v18 = vld [vmem:[%s8070_s8 + $0xd8] sm:$0xff]   ;;  %v7472_v22 = vld [vmem:[%s8070_s8 + $0xd0] sm:$0xff]  }
  0x1b   : > { %v7465_v15 = vld [vmem:[%s8070_s8 + $0x20] sm:$0xff]   ;;  %v7469_v19 = vld [vmem:[%s8070_s8 + $0x18] sm:$0xff]   ;;  %v7473_v23 = vld [vmem:[%s8070_s8 + $0x10] sm:$0xff]  }
  0x1c   : > { %6676 = vmatpush3.bf16.msra.mxu0 %v7457_v7  ;;  %v7466_v16 = vld [vmem:[%s8070_s8 + $0xa0] sm:$0xff]   ;;  %v7470_v20 = vld [vmem:[%s8070_s8 + $0x98] sm:$0xff]   ;;  %v7474_v24 = vld [vmem:[%s8070_s8 + $0x90] sm:$0xff]  }
  0x1d   : > { %6698 = vmatpush3.bf16.msra.mxu1 %v7458_v8  ;;  %6677 = vmatprep.subr.bf16.mxu0 %v7459_v9  ;;  %v7475_v25 = vld [vmem:[%s8070_s8 + $0x48] sm:$0xff]   ;;  %v7479_v29 = vld [vmem:[%s8070_s8 + $0x40] sm:$0xff]   ;;  %v273_v34 = vld [vmem:[%s8065_s28 + $0x18] sm:$0xff] }
  0x1e   : > { %6699 = vmatprep.subr.bf16.mxu1 %v7460_v10  ;;  %v7476_v26 = vld [vmem:[%s8070_s8 + $0xc8] sm:$0xff]   ;;  %v7480_v30 = vld [vmem:[%s8070_s8 + $0xc0] sm:$0xff]   ;;  %v337_v37 = vpack.c.bf16 %v273_v34, %v273_v34  ;;  %v272_v39 = vld [vmem:[%s8065_s28 + $0x10] sm:$0xff] }
  0x1f   : > { %v7477_v27 = vld [vmem:[%s8070_s8 + $0x8] sm:$0xff]   ;;  %v7481_v31 = vld [vmem:[%s8070_s8] sm:$0xff]   ;;  %v336_v40 = vpack.c.bf16 %v272_v39, %v272_v39  ;;  %v7483_v41 = vld [vmem:[%s8070_s8 + $0x178] sm:$0xff]  }
  0x20   : > { %6678 = vmatpush3.bf16.msra.mxu0 %v7461_v11  ;;  %v7478_v28 = vld [vmem:[%s8070_s8 + $0x88] sm:$0xff]   ;;  %v7482_v32 = vld [vmem:[%s8070_s8 + $0x80] sm:$0xff]   ;;  %4566 = vmatprep.mubr.bf16.mxu1 %v337_v37  ;;  %v7484_v42 = vld [vmem:[%s8070_s8 + $0x1f8] sm:$0xff]  }
  0x21   : > { %6700 = vmatpush3.bf16.msra.mxu1 %v7462_v12  ;;  %6679 = vmatprep.subr.bf16.mxu0 %v7463_v13  ;;  %v271_v33 = vld [vmem:[%s8065_s28 + $0x8] sm:$0xff]  ;;  %v270_v35 = vld [vmem:[%s8065_s28] sm:$0xff]  ;;  %v7485_v43 = vld [vmem:[%s8070_s8 + $0x138] sm:$0xff]  }
  0x22   : > { %6701 = vmatprep.subr.bf16.mxu1 %v7464_v14  ;;  %v335_v36 = vpack.c.bf16 %v271_v33, %v271_v33  ;;  %v334_v38 = vpack.c.bf16 %v270_v35, %v270_v35  ;;  %v7486_v44 = vld [vmem:[%s8070_s8 + $0x1b8] sm:$0xff]   ;;  %v7487_v45 = vld [vmem:[%s8070_s8 + $0x170] sm:$0xff]   ;;  %v7491_v49 = vld [vmem:[%s8070_s8 + $0x168] sm:$0xff]  }
  0x23   : > { %v7488_v46 = vld [vmem:[%s8070_s8 + $0x1f0] sm:$0xff]   ;;  %v7492_v50 = vld [vmem:[%s8070_s8 + $0x1e8] sm:$0xff]   ;;  %v7495_v53 = vld [vmem:[%s8070_s8 + $0x160] sm:$0xff]  }
  0x24   : > { %6680 = vmatpush3.bf16.msra.mxu0 %v7465_v15  ;;  %4526 = vmatprep.mubr.bf16.mxu0 %v335_v36  ;;  %v7489_v47 = vld [vmem:[%s8070_s8 + $0x130] sm:$0xff]   ;;  %v7493_v51 = vld [vmem:[%s8070_s8 + $0x128] sm:$0xff]   ;;  %v7496_v54 = vld [vmem:[%s8070_s8 + $0x1e0] sm:$0xff]  }
  0x25   : > { %6702 = vmatpush3.bf16.msra.mxu1 %v7466_v16  ;;  %6681 = vmatprep.subr.bf16.mxu0 %v7467_v17  ;;  %v7490_v48 = vld [vmem:[%s8070_s8 + $0x1b0] sm:$0xff]   ;;  %v7494_v52 = vld [vmem:[%s8070_s8 + $0x1a8] sm:$0xff]   ;;  %v7497_v55 = vld [vmem:[%s8070_s8 + $0x120] sm:$0xff]  }
  0x26   : > { %6703 = vmatprep.subr.bf16.mxu1 %v7468_v18  ;;  %v7498_v56 = vld [vmem:[%s8070_s8 + $0x1a0] sm:$0xff]   ;;  %v7499_v57 = vld [vmem:[%s8070_s8 + $0x158] sm:$0xff]   ;;  %v7503_v61 = vld [vmem:[%s8070_s8 + $0x150] sm:$0xff]  }
  0x27   : > { %v7500_v58 = vld [vmem:[%s8070_s8 + $0x1d8] sm:$0xff]   ;;  %v7504_v62 = vld [vmem:[%s8070_s8 + $0x1d0] sm:$0xff]   ;;  %v7507_v1 = vld [vmem:[%s8070_s8 + $0x148] sm:$0xff]  }
  0x28   : > { %6682 = vmatpush3.bf16.msra.mxu0 %v7469_v19  ;;  %v7501_v59 = vld [vmem:[%s8070_s8 + $0x118] sm:$0xff]   ;;  %v7505_v63 = vld [vmem:[%s8070_s8 + $0x110] sm:$0xff]   ;;  %v7508_v2 = vld [vmem:[%s8070_s8 + $0x1c8] sm:$0xff]  }
  0x29   : > { %6704 = vmatpush3.bf16.msra.mxu1 %v7470_v20  ;;  %6683 = vmatprep.subr.bf16.mxu0 %v7471_v21  ;;  %v7502_v60 = vld [vmem:[%s8070_s8 + $0x198] sm:$0xff]   ;;  %v7506_v0 = vld [vmem:[%s8070_s8 + $0x190] sm:$0xff]   ;;  %v7509_v3 = vld [vmem:[%s8070_s8 + $0x108] sm:$0xff]  }
  0x2a   : > { %6705 = vmatprep.subr.bf16.mxu1 %v7472_v22  ;;  %v7510_v4 = vld [vmem:[%s8070_s8 + $0x188] sm:$0xff]   ;;  %v7511_v5 = vld [vmem:[%s8070_s8 + $0x140] sm:$0xff]   ;;  %v277_v10 = vld [vmem:[%s8065_s28 + $0x38] sm:$0xff] }
  0x2b   : > { %v7512_v6 = vld [vmem:[%s8070_s8 + $0x1c0] sm:$0xff]   ;;  %v275_v9 = vld [vmem:[%s8065_s28 + $0x28] sm:$0xff]  ;;  %v341_v12 = vpack.c.bf16 %v277_v10, %v277_v10  ;;  %v276_v14 = vld [vmem:[%s8065_s28 + $0x30] sm:$0xff] }
  0x2c   : > { %6684 = vmatpush3.bf16.msra.mxu0 %v7473_v23  ;;  %v7513_v7 = vld [vmem:[%s8070_s8 + $0x100] sm:$0xff]   ;;  %v339_v11 = vpack.c.bf16 %v275_v9, %v275_v9  ;;  %v340_v16 = vpack.c.bf16 %v276_v14, %v276_v14  ;;  %v7515_v17 = vld [vmem:[%s8070_s8 + $0x278] sm:$0xff]   ;;  %v7519_v21 = vld [vmem:[%s8070_s8 + $0x270] sm:$0xff]  }
  0x2d   : > { %6706 = vmatpush3.bf16.msra.mxu1 %v7474_v24  ;;  %6685 = vmatprep.subr.bf16.mxu0 %v7475_v25  ;;  %v7514_v8 = vld [vmem:[%s8070_s8 + $0x180] sm:$0xff]   ;;  %v7516_v18 = vld [vmem:[%s8070_s8 + $0x2f8] sm:$0xff]   ;;  %v7520_v22 = vld [vmem:[%s8070_s8 + $0x2f0] sm:$0xff]  }
  0x2e   : > { %6707 = vmatprep.subr.bf16.mxu1 %v7476_v26  ;;  %v274_v13 = vld [vmem:[%s8065_s28 + $0x20] sm:$0xff]  ;;  %v7517_v19 = vld [vmem:[%s8070_s8 + $0x238] sm:$0xff]   ;;  %v7521_v23 = vld [vmem:[%s8070_s8 + $0x230] sm:$0xff]  }
  0x2f   : > { %v338_v15 = vpack.c.bf16 %v274_v13, %v274_v13  ;;  %v7518_v20 = vld [vmem:[%s8070_s8 + $0x2b8] sm:$0xff]   ;;  %v7522_v24 = vld [vmem:[%s8070_s8 + $0x2b0] sm:$0xff]   ;;  %v7523_v25 = vld [vmem:[%s8070_s8 + $0x268] sm:$0xff]  }
  0x30   : > { %6686 = vmatpush3.bf16.msra.mxu0 %v7477_v27  ;;  %v7524_v26 = vld [vmem:[%s8070_s8 + $0x2e8] sm:$0xff]   ;;  %v7531_v33 = vld [vmem:[%s8070_s8 + $0x258] sm:$0xff]   ;;  %v7535_v37 = vld [vmem:[%s8070_s8 + $0x250] sm:$0xff]  }
  0x31   : > { %6708 = vmatpush3.bf16.msra.mxu1 %v7478_v28  ;;  %6687 = vmatprep.subr.bf16.mxu0 %v7479_v29  ;;  %v7525_v27 = vld [vmem:[%s8070_s8 + $0x228] sm:$0xff]   ;;  %v7527_v29 = vld [vmem:[%s8070_s8 + $0x260] sm:$0xff]   ;;  %v7532_v34 = vld [vmem:[%s8070_s8 + $0x2d8] sm:$0xff]  }
  0x32   : > { %6709 = vmatprep.subr.bf16.mxu1 %v7480_v30  ;;  %v7526_v28 = vld [vmem:[%s8070_s8 + $0x2a8] sm:$0xff]   ;;  %v7528_v30 = vld [vmem:[%s8070_s8 + $0x2e0] sm:$0xff]   ;;  %v7533_v35 = vld [vmem:[%s8070_s8 + $0x218] sm:$0xff]  }
  0x33   : > { %v7534_v36 = vld [vmem:[%s8070_s8 + $0x298] sm:$0xff]   ;;  %v7537_v39 = vld [vmem:[%s8070_s8 + $0x210] sm:$0xff]  }
  0x34   : > { %6688 = vmatpush3.bf16.msra.mxu0 %v7481_v31  ;;  %v7529_v31 = vld [vmem:[%s8070_s8 + $0x220] sm:$0xff]   ;;  %v7563_v9 = vld [vmem:[%s8070_s8 + $0x358] sm:$0xff]   ;;  %v7567_v13 = vld [vmem:[%s8070_s8 + $0x350] sm:$0xff]  }
  0x35   : > { %6710 = vmatpush3.bf16.msra.mxu1 %v7482_v32  ;;  %6717 = vmatprep.subr.bf16.mxu0 %v7483_v41  ;;  %v7530_v32 = vld [vmem:[%s8070_s8 + $0x2a0] sm:$0xff]   ;;  %v7539_v41 = vld [vmem:[%s8070_s8 + $0x248] sm:$0xff]   ;;  %v7564_v10 = vld [vmem:[%s8070_s8 + $0x3d8] sm:$0xff]  }
  0x36   : > { %6739 = vmatprep.subr.bf16.mxu1 %v7484_v42  ;;  %v7540_v42 = vld [vmem:[%s8070_s8 + $0x2c8] sm:$0xff]   ;;  %v7568_v14 = vld [vmem:[%s8070_s8 + $0x3d0] sm:$0xff]  }
  0x37   : > { %4527 = vmatmul.mubr.bf16.vlgmr.msra.gmra.mxu0 %v334_v38  ;;  %v7536_v38 = vld [vmem:[%s8070_s8 + $0x2d0] sm:$0xff]  }
  0x38   : > { %4567 = vmatmul.mubr.bf16.vlgmr.msra.gmra.mxu1 %v336_v40  ;;  %6718 = vmatpush3.bf16.msra.mxu0 %v7485_v43  ;;  %v7538_v40 = vld [vmem:[%s8070_s8 + $0x290] sm:$0xff]   ;;  %v7541_v43 = vld [vmem:[%s8070_s8 + $0x208] sm:$0xff]  }
  0x39   : > { %6740 = vmatpush3.bf16.msra.mxu1 %v7486_v44  ;;  %6719 = vmatprep.subr.bf16.mxu0 %v7487_v45  ;;  %v7542_v44 = vld [vmem:[%s8070_s8 + $0x288] sm:$0xff]   ;;  %v7543_v45 = vld [vmem:[%s8070_s8 + $0x240] sm:$0xff]  }
  0x3a   : > { %6741 = vmatprep.subr.bf16.mxu1 %v7488_v46  ;;  %4606 = vmatprep.mubr.bf16.mxu0 %v339_v11  ;;  %v7544_v46 = vld [vmem:[%s8070_s8 + $0x2c0] sm:$0xff]   ;;  %v7565_v11 = vld [vmem:[%s8070_s8 + $0x318] sm:$0xff]  }
  0x3b   : > { %4646 = vmatprep.mubr.bf16.mxu1 %v341_v12  ;;  %v7566_v12 = vld [vmem:[%s8070_s8 + $0x398] sm:$0xff]  }
  0x3c   : > { %6720 = vmatpush3.bf16.msra.mxu0 %v7489_v47  ;;  %v7545_v47 = vld [vmem:[%s8070_s8 + $0x200] sm:$0xff]  }
  0x3d   : > { %6742 = vmatpush3.bf16.msra.mxu1 %v7490_v48  ;;  %6721 = vmatprep.subr.bf16.mxu0 %v7491_v49  ;;  %v7546_v48 = vld [vmem:[%s8070_s8 + $0x280] sm:$0xff]   ;;  %v279_v49 = vld [vmem:[%s8065_s28 + $0x48] sm:$0xff] }
  0x3e   : > { %6743 = vmatprep.subr.bf16.mxu1 %v7492_v50  ;;  %v343_v50 = vpack.c.bf16 %v279_v49, %v279_v49  ;;  %v7595_v49 = vld [vmem:[%s8070_s8 + $0x458] sm:$0xff]  }
  0x40   : > { %6722 = vmatpush3.bf16.msra.mxu0 %v7493_v51  ;;  %v281_v51 = vld [vmem:[%s8065_s28 + $0x58] sm:$0xff] }
  0x41   : > { %6744 = vmatpush3.bf16.msra.mxu1 %v7494_v52  ;;  %6723 = vmatprep.subr.bf16.mxu0 %v7495_v53  ;;  %v278_v52 = vld [vmem:[%s8065_s28 + $0x40] sm:$0xff]  ;;  %v280_v53 = vld [vmem:[%s8065_s28 + $0x50] sm:$0xff] }
  0x42   : > { %6745 = vmatprep.subr.bf16.mxu1 %v7496_v54  ;;  %v345_v54 = vpack.c.bf16 %v281_v51, %v281_v51  ;;  %v7597_v51 = vld [vmem:[%s8070_s8 + $0x418] sm:$0xff]  }
  0x44   : > { %6724 = vmatpush3.bf16.msra.mxu0 %v7497_v55  ;;  %v342_v55 = vpack.c.bf16 %v278_v52, %v278_v52  ;;  %v7598_v52 = vld [vmem:[%s8070_s8 + $0x498] sm:$0xff]  }
  0x45   : > { %6746 = vmatpush3.bf16.msra.mxu1 %v7498_v56  ;;  %6725 = vmatprep.subr.bf16.mxu0 %v7499_v57  ;;  %v344_v56 = vpack.c.bf16 %v280_v53, %v280_v53  ;;  %v7547_v57 = vld [vmem:[%s8070_s8 + $0x378] sm:$0xff]   ;;  %v7599_v53 = vld [vmem:[%s8070_s8 + $0x450] sm:$0xff]  }
  0x46   : > { %6747 = vmatprep.subr.bf16.mxu1 %v7500_v58  ;;  %v7548_v58 = vld [vmem:[%s8070_s8 + $0x3f8] sm:$0xff]  }
  0x48   : > { %6726 = vmatpush3.bf16.msra.mxu0 %v7501_v59  ;;  %v7549_v59 = vld [vmem:[%s8070_s8 + $0x338] sm:$0xff]  }
  0x49   : > { %6748 = vmatpush3.bf16.msra.mxu1 %v7502_v60  ;;  %6727 = vmatprep.subr.bf16.mxu0 %v7503_v61  ;;  %v7550_v60 = vld [vmem:[%s8070_s8 + $0x3b8] sm:$0xff]   ;;  %v7551_v61 = vld [vmem:[%s8070_s8 + $0x370] sm:$0xff]  }
  0x4a   : > { %6749 = vmatprep.subr.bf16.mxu1 %v7504_v62  ;;  %v7552_v62 = vld [vmem:[%s8070_s8 + $0x3f0] sm:$0xff]  }
  0x4c   : > { %6728 = vmatpush3.bf16.msra.mxu0 %v7505_v63  ;;  %v7553_v63 = vld [vmem:[%s8070_s8 + $0x330] sm:$0xff]  }
  0x4d   : > { %6750 = vmatpush3.bf16.msra.mxu1 %v7506_v0  ;;  %6729 = vmatprep.subr.bf16.mxu0 %v7507_v1  ;;  %v7554_v0 = vld [vmem:[%s8070_s8 + $0x3b0] sm:$0xff]   ;;  %v7555_v1 = vld [vmem:[%s8070_s8 + $0x368] sm:$0xff]  }
  0x4e   : > { %6751 = vmatprep.subr.bf16.mxu1 %v7508_v2  ;;  %v7556_v2 = vld [vmem:[%s8070_s8 + $0x3e8] sm:$0xff]  }
  0x50   : > { %6730 = vmatpush3.bf16.msra.mxu0 %v7509_v3  ;;  %v7557_v3 = vld [vmem:[%s8070_s8 + $0x328] sm:$0xff]  }
  0x51   : > { %6752 = vmatpush3.bf16.msra.mxu1 %v7510_v4  ;;  %6731 = vmatprep.subr.bf16.mxu0 %v7511_v5  ;;  %v7558_v4 = vld [vmem:[%s8070_s8 + $0x3a8] sm:$0xff]   ;;  %v7559_v5 = vld [vmem:[%s8070_s8 + $0x360] sm:$0xff]  }
  0x52   : > { %6753 = vmatprep.subr.bf16.mxu1 %v7512_v6  ;;  %v7560_v6 = vld [vmem:[%s8070_s8 + $0x3e0] sm:$0xff]  }
  0x54   : > { %6732 = vmatpush3.bf16.msra.mxu0 %v7513_v7  ;;  %v7561_v7 = vld [vmem:[%s8070_s8 + $0x320] sm:$0xff]  }
  0x55   : > { %6754 = vmatpush3.bf16.msra.mxu1 %v7514_v8  ;;  %6761 = vmatprep.subr.bf16.mxu0 %v7515_v17  ;;  %v7562_v8 = vld [vmem:[%s8070_s8 + $0x3a0] sm:$0xff]   ;;  %v7571_v17 = vld [vmem:[%s8070_s8 + $0x348] sm:$0xff]  }
  0x56   : > { %6783 = vmatprep.subr.bf16.mxu1 %v7516_v18  ;;  %v7572_v18 = vld [vmem:[%s8070_s8 + $0x3c8] sm:$0xff]  }
  0x57   : > { %4607 = vmatmul.mubr.bf16.vlgmr.msra.gmra.mxu0 %v338_v15  ;;  %v7569_v15 = vld [vmem:[%s8070_s8 + $0x310] sm:$0xff]  }
  0x58   : > { %4647 = vmatmul.mubr.bf16.vlgmr.msra.gmra.mxu1 %v340_v16  ;;  %6762 = vmatpush3.bf16.msra.mxu0 %v7517_v19  ;;  %v7570_v16 = vld [vmem:[%s8070_s8 + $0x390] sm:$0xff]   ;;  %v7573_v19 = vld [vmem:[%s8070_s8 + $0x308] sm:$0xff]  }
  0x59   : > { %6784 = vmatpush3.bf16.msra.mxu1 %v7518_v20  ;;  %6763 = vmatprep.subr.bf16.mxu0 %v7519_v21  ;;  %v7574_v20 = vld [vmem:[%s8070_s8 + $0x388] sm:$0xff]   ;;  %v7575_v21 = vld [vmem:[%s8070_s8 + $0x340] sm:$0xff]  }
  0x5a   : > { %6785 = vmatprep.subr.bf16.mxu1 %v7520_v22  ;;  %4686 = vmatprep.mubr.bf16.mxu0 %v343_v50  ;;  %v7576_v22 = vld [vmem:[%s8070_s8 + $0x3c0] sm:$0xff]   ;;  %v7596_v50 = vld [vmem:[%s8070_s8 + $0x4d8] sm:$0xff]  }
  0x5b   : > { %4726 = vmatprep.mubr.bf16.mxu1 %v345_v54  ;;  %v7600_v54 = vld [vmem:[%s8070_s8 + $0x4d0] sm:$0xff]  }
  0x5c   : > { %6764 = vmatpush3.bf16.msra.mxu0 %v7521_v23  ;;  %v7577_v23 = vld [vmem:[%s8070_s8 + $0x300] sm:$0xff]  }
  0x5d   : > { %6786 = vmatpush3.bf16.msra.mxu1 %v7522_v24  ;;  %6765 = vmatprep.subr.bf16.mxu0 %v7523_v25  ;;  %v7578_v24 = vld [vmem:[%s8070_s8 + $0x380] sm:$0xff]   ;;  %v283_v25 = vld [vmem:[%s8065_s28 + $0x68] sm:$0xff] }
  0x5e   : > { %6787 = vmatprep.subr.bf16.mxu1 %v7524_v26  ;;  %v285_v26 = vld [vmem:[%s8065_s28 + $0x78] sm:$0xff] }
  0x60   : > { %6766 = vmatpush3.bf16.msra.mxu0 %v7525_v27  ;;  %v282_v27 = vld [vmem:[%s8065_s28 + $0x60] sm:$0xff] }
  0x61   : > { %6788 = vmatpush3.bf16.msra.mxu1 %v7526_v28  ;;  %6767 = vmatprep.subr.bf16.mxu0 %v7527_v29  ;;  %v347_v28 = vpack.c.bf16 %v283_v25, %v283_v25  ;;  %v349_v29 = vpack.c.bf16 %v285_v26, %v285_v26  ;;  %v7627_v25 = vld [vmem:[%s8070_s8 + $0x558] sm:$0xff]  }
  0x62   : > { %6789 = vmatprep.subr.bf16.mxu1 %v7528_v30  ;;  %v346_v30 = vpack.c.bf16 %v282_v27, %v282_v27  ;;  %v7628_v26 = vld [vmem:[%s8070_s8 + $0x5d8] sm:$0xff]  }
  0x63   : > { %v7629_v27 = vld [vmem:[%s8070_s8 + $0x518] sm:$0xff]  }
  0x64   : > { %6768 = vmatpush3.bf16.msra.mxu0 %v7529_v31  ;;  %v284_v31 = vld [vmem:[%s8065_s28 + $0x70] sm:$0xff] }
  0x65   : > { %6790 = vmatpush3.bf16.msra.mxu1 %v7530_v32  ;;  %6769 = vmatprep.subr.bf16.mxu0 %v7531_v33  ;;  %v348_v32 = vpack.c.bf16 %v284_v31, %v284_v31  ;;  %v7579_v33 = vld [vmem:[%s8070_s8 + $0x478] sm:$0xff]   ;;  %v7633_v31 = vld [vmem:[%s8070_s8 + $0x510] sm:$0xff]  }
  0x66   : > { %6791 = vmatprep.subr.bf16.mxu1 %v7532_v34  ;;  %v7580_v34 = vld [vmem:[%s8070_s8 + $0x4f8] sm:$0xff]  }
  0x68   : > { %6770 = vmatpush3.bf16.msra.mxu0 %v7533_v35  ;;  %v7581_v35 = vld [vmem:[%s8070_s8 + $0x438] sm:$0xff]  }
  0x69   : > { %6792 = vmatpush3.bf16.msra.mxu1 %v7534_v36  ;;  %6771 = vmatprep.subr.bf16.mxu0 %v7535_v37  ;;  %v7582_v36 = vld [vmem:[%s8070_s8 + $0x4b8] sm:$0xff]   ;;  %v7583_v37 = vld [vmem:[%s8070_s8 + $0x470] sm:$0xff]  }
  0x6a   : > { %6793 = vmatprep.subr.bf16.mxu1 %v7536_v38  ;;  %v7584_v38 = vld [vmem:[%s8070_s8 + $0x4f0] sm:$0xff]  }
  0x6c   : > { %6772 = vmatpush3.bf16.msra.mxu0 %v7537_v39  ;;  %v7585_v39 = vld [vmem:[%s8070_s8 + $0x430] sm:$0xff]  }
  0x6d   : > { %6794 = vmatpush3.bf16.msra.mxu1 %v7538_v40  ;;  %6773 = vmatprep.subr.bf16.mxu0 %v7539_v41  ;;  %v7586_v40 = vld [vmem:[%s8070_s8 + $0x4b0] sm:$0xff]   ;;  %v7587_v41 = vld [vmem:[%s8070_s8 + $0x468] sm:$0xff]  }
  0x6e   : > { %6795 = vmatprep.subr.bf16.mxu1 %v7540_v42  ;;  %v7588_v42 = vld [vmem:[%s8070_s8 + $0x4e8] sm:$0xff]  }
  0x70   : > { %6774 = vmatpush3.bf16.msra.mxu0 %v7541_v43  ;;  %v7589_v43 = vld [vmem:[%s8070_s8 + $0x428] sm:$0xff]  }
  0x71   : > { %6796 = vmatpush3.bf16.msra.mxu1 %v7542_v44  ;;  %6775 = vmatprep.subr.bf16.mxu0 %v7543_v45  ;;  %v7590_v44 = vld [vmem:[%s8070_s8 + $0x4a8] sm:$0xff]   ;;  %v7591_v45 = vld [vmem:[%s8070_s8 + $0x460] sm:$0xff]  }
  0x72   : > { %6797 = vmatprep.subr.bf16.mxu1 %v7544_v46  ;;  %v7592_v46 = vld [vmem:[%s8070_s8 + $0x4e0] sm:$0xff]  }
  0x74   : > { %6776 = vmatpush3.bf16.msra.mxu0 %v7545_v47  ;;  %v7593_v47 = vld [vmem:[%s8070_s8 + $0x420] sm:$0xff]  }
  0x75   : > { %6798 = vmatpush3.bf16.msra.mxu1 %v7546_v48  ;;  %6805 = vmatprep.subr.bf16.mxu0 %v7547_v57  ;;  %v7594_v48 = vld [vmem:[%s8070_s8 + $0x4a0] sm:$0xff]   ;;  %v7603_v57 = vld [vmem:[%s8070_s8 + $0x448] sm:$0xff]  }
  0x76   : > { %6827 = vmatprep.subr.bf16.mxu1 %v7548_v58  ;;  %v7604_v58 = vld [vmem:[%s8070_s8 + $0x4c8] sm:$0xff]  }
  0x77   : > { %4687 = vmatmul.mubr.bf16.vlgmr.msra.gmra.mxu0 %v342_v55  ;;  %v7601_v55 = vld [vmem:[%s8070_s8 + $0x410] sm:$0xff]  }
  0x78   : > { %4727 = vmatmul.mubr.bf16.vlgmr.msra.gmra.mxu1 %v344_v56  ;;  %6806 = vmatpush3.bf16.msra.mxu0 %v7549_v59  ;;  %v7602_v56 = vld [vmem:[%s8070_s8 + $0x490] sm:$0xff]   ;;  %v7605_v59 = vld [vmem:[%s8070_s8 + $0x408] sm:$0xff]  }
  0x79   : > { %6828 = vmatpush3.bf16.msra.mxu1 %v7550_v60  ;;  %6807 = vmatprep.subr.bf16.mxu0 %v7551_v61  ;;  %v7606_v60 = vld [vmem:[%s8070_s8 + $0x488] sm:$0xff]   ;;  %v7607_v61 = vld [vmem:[%s8070_s8 + $0x440] sm:$0xff]  }
  0x7a   : > { %6829 = vmatprep.subr.bf16.mxu1 %v7552_v62  ;;  %4766 = vmatprep.mubr.bf16.mxu0 %v347_v28  ;;  %v7608_v62 = vld [vmem:[%s8070_s8 + $0x4c0] sm:$0xff]   ;;  %v7630_v28 = vld [vmem:[%s8070_s8 + $0x598] sm:$0xff]  }
  0x7b   : > { %4806 = vmatprep.mubr.bf16.mxu1 %v349_v29  ;;  %v7631_v29 = vld [vmem:[%s8070_s8 + $0x550] sm:$0xff]  }
  0x7c   : > { %6808 = vmatpush3.bf16.msra.mxu0 %v7553_v63  ;;  %v7609_v63 = vld [vmem:[%s8070_s8 + $0x400] sm:$0xff]  }
  0x7d   : > { %6830 = vmatpush3.bf16.msra.mxu1 %v7554_v0  ;;  %6809 = vmatprep.subr.bf16.mxu0 %v7555_v1  ;;  %v7610_v0 = vld [vmem:[%s8070_s8 + $0x480] sm:$0xff]   ;;  %v287_v1 = vld [vmem:[%s8065_s28 + $0x88] sm:$0xff] }
  0x7e   : > { %6831 = vmatprep.subr.bf16.mxu1 %v7556_v2  ;;  %v289_v2 = vld [vmem:[%s8065_s28 + $0x98] sm:$0xff] }
  0x80   : > { %6810 = vmatpush3.bf16.msra.mxu0 %v7557_v3  ;;  %v351_v3 = vpack.c.bf16 %v287_v1, %v287_v1  ;;  %v7659_v1 = vld [vmem:[%s8070_s8 + $0x658] sm:$0xff]  }
  0x81   : > { %6832 = vmatpush3.bf16.msra.mxu1 %v7558_v4  ;;  %6811 = vmatprep.subr.bf16.mxu0 %v7559_v5  ;;  %v353_v4 = vpack.c.bf16 %v289_v2, %v289_v2  ;;  %v286_v5 = vld [vmem:[%s8065_s28 + $0x80] sm:$0xff]  ;;  %v7660_v2 = vld [vmem:[%s8070_s8 + $0x6d8] sm:$0xff]  }
  0x82   : > { %6833 = vmatprep.subr.bf16.mxu1 %v7560_v6  ;;  %v288_v6 = vld [vmem:[%s8065_s28 + $0x90] sm:$0xff] }
  0x84   : > { %6812 = vmatpush3.bf16.msra.mxu0 %v7561_v7  ;;  %v350_v7 = vpack.c.bf16 %v286_v5, %v286_v5  ;;  %v7663_v5 = vld [vmem:[%s8070_s8 + $0x650] sm:$0xff]  }
  0x85   : > { %6834 = vmatpush3.bf16.msra.mxu1 %v7562_v8  ;;  %6813 = vmatprep.subr.bf16.mxu0 %v7563_v9  ;;  %v352_v8 = vpack.c.bf16 %v288_v6, %v288_v6  ;;  %v7611_v9 = vld [vmem:[%s8070_s8 + $0x578] sm:$0xff]   ;;  %v7664_v6 = vld [vmem:[%s8070_s8 + $0x6d0] sm:$0xff]  }
  0x86   : > { %6835 = vmatprep.subr.bf16.mxu1 %v7564_v10  ;;  %v7612_v10 = vld [vmem:[%s8070_s8 + $0x5f8] sm:$0xff]  }
  0x88   : > { %6814 = vmatpush3.bf16.msra.mxu0 %v7565_v11  ;;  %v7613_v11 = vld [vmem:[%s8070_s8 + $0x538] sm:$0xff]  }
  0x89   : > { %6836 = vmatpush3.bf16.msra.mxu1 %v7566_v12  ;;  %6815 = vmatprep.subr.bf16.mxu0 %v7567_v13  ;;  %v7614_v12 = vld [vmem:[%s8070_s8 + $0x5b8] sm:$0xff]   ;;  %v7615_v13 = vld [vmem:[%s8070_s8 + $0x570] sm:$0xff]  }
  0x8a   : > { %6837 = vmatprep.subr.bf16.mxu1 %v7568_v14  ;;  %v7616_v14 = vld [vmem:[%s8070_s8 + $0x5f0] sm:$0xff]  }
  0x8c   : > { %6816 = vmatpush3.bf16.msra.mxu0 %v7569_v15  ;;  %v7617_v15 = vld [vmem:[%s8070_s8 + $0x530] sm:$0xff]  }
  0x8d   : > { %6838 = vmatpush3.bf16.msra.mxu1 %v7570_v16  ;;  %6817 = vmatprep.subr.bf16.mxu0 %v7571_v17  ;;  %v7618_v16 = vld [vmem:[%s8070_s8 + $0x5b0] sm:$0xff]   ;;  %v7619_v17 = vld [vmem:[%s8070_s8 + $0x568] sm:$0xff]  }
  0x8e   : > { %6839 = vmatprep.subr.bf16.mxu1 %v7572_v18  ;;  %v7620_v18 = vld [vmem:[%s8070_s8 + $0x5e8] sm:$0xff]  }
  0x90   : > { %6818 = vmatpush3.bf16.msra.mxu0 %v7573_v19  ;;  %v7621_v19 = vld [vmem:[%s8070_s8 + $0x528] sm:$0xff]  }
  0x91   : > { %6840 = vmatpush3.bf16.msra.mxu1 %v7574_v20  ;;  %6819 = vmatprep.subr.bf16.mxu0 %v7575_v21  ;;  %v7622_v20 = vld [vmem:[%s8070_s8 + $0x5a8] sm:$0xff]   ;;  %v7623_v21 = vld [vmem:[%s8070_s8 + $0x560] sm:$0xff]  }
  0x92   : > { %6841 = vmatprep.subr.bf16.mxu1 %v7576_v22  ;;  %v7624_v22 = vld [vmem:[%s8070_s8 + $0x5e0] sm:$0xff]  }
  0x94   : > { %6820 = vmatpush3.bf16.msra.mxu0 %v7577_v23  ;;  %v7625_v23 = vld [vmem:[%s8070_s8 + $0x520] sm:$0xff]  }
  0x95   : > { %6842 = vmatpush3.bf16.msra.mxu1 %v7578_v24  ;;  %6849 = vmatprep.subr.bf16.mxu0 %v7579_v33  ;;  %v7626_v24 = vld [vmem:[%s8070_s8 + $0x5a0] sm:$0xff]   ;;  %v7635_v33 = vld [vmem:[%s8070_s8 + $0x548] sm:$0xff]  }
  0x96   : > { %6871 = vmatprep.subr.bf16.mxu1 %v7580_v34  ;;  %v7636_v34 = vld [vmem:[%s8070_s8 + $0x5c8] sm:$0xff]  }
  0x97   : > { %4767 = vmatmul.mubr.bf16.vlgmr.msra.gmra.mxu0 %v346_v30  ;;  %v7632_v30 = vld [vmem:[%s8070_s8 + $0x5d0] sm:$0xff]  }
  0x98   : > { %4807 = vmatmul.mubr.bf16.vlgmr.msra.gmra.mxu1 %v348_v32  ;;  %6850 = vmatpush3.bf16.msra.mxu0 %v7581_v35  ;;  %v7634_v32 = vld [vmem:[%s8070_s8 + $0x590] sm:$0xff]   ;;  %v7637_v35 = vld [vmem:[%s8070_s8 + $0x508] sm:$0xff]  }
  0x99   : > { %6872 = vmatpush3.bf16.msra.mxu1 %v7582_v36  ;;  %6851 = vmatprep.subr.bf16.mxu0 %v7583_v37  ;;  %v7638_v36 = vld [vmem:[%s8070_s8 + $0x588] sm:$0xff]   ;;  %v7639_v37 = vld [vmem:[%s8070_s8 + $0x540] sm:$0xff]  }
  0x9a   : > { %6873 = vmatprep.subr.bf16.mxu1 %v7584_v38  ;;  %4846 = vmatprep.mubr.bf16.mxu0 %v351_v3  ;;  %v7640_v38 = vld [vmem:[%s8070_s8 + $0x5c0] sm:$0xff]   ;;  %v7661_v3 = vld [vmem:[%s8070_s8 + $0x618] sm:$0xff]  }
  0x9b   : > { %4886 = vmatprep.mubr.bf16.mxu1 %v353_v4  ;;  %v7662_v4 = vld [vmem:[%s8070_s8 + $0x698] sm:$0xff]  }
  0x9c   : > { %6852 = vmatpush3.bf16.msra.mxu0 %v7585_v39  ;;  %v7641_v39 = vld [vmem:[%s8070_s8 + $0x500] sm:$0xff]  }
  0x9d   : > { %6874 = vmatpush3.bf16.msra.mxu1 %v7586_v40  ;;  %6853 = vmatprep.subr.bf16.mxu0 %v7587_v41  ;;  %v7642_v40 = vld [vmem:[%s8070_s8 + $0x580] sm:$0xff]   ;;  %v291_v41 = vld [vmem:[%s8065_s28 + $0xa8] sm:$0xff] }
  0x9e   : > { %6875 = vmatprep.subr.bf16.mxu1 %v7588_v42  ;;  %v355_v42 = vpack.c.bf16 %v291_v41, %v291_v41  ;;  %v7680_v41 = vld [vmem:[%s8070_s8 + $0x7f0] sm:$0xff]  }
  0xa0   : > { %6854 = vmatpush3.bf16.msra.mxu0 %v7589_v43  ;;  %v293_v43 = vld [vmem:[%s8065_s28 + $0xb8] sm:$0xff] }
  0xa1   : > { %6876 = vmatpush3.bf16.msra.mxu1 %v7590_v44  ;;  %6855 = vmatprep.subr.bf16.mxu0 %v7591_v45  ;;  %v290_v44 = vld [vmem:[%s8065_s28 + $0xa0] sm:$0xff]  ;;  %v292_v45 = vld [vmem:[%s8065_s28 + $0xb0] sm:$0xff] }
  0xa2   : > { %6877 = vmatprep.subr.bf16.mxu1 %v7592_v46  ;;  %v357_v46 = vpack.c.bf16 %v293_v43, %v293_v43  ;;  %v7682_v43 = vld [vmem:[%s8070_s8 + $0x7b0] sm:$0xff]  }
  0xa4   : > { %6856 = vmatpush3.bf16.msra.mxu0 %v7593_v47  ;;  %v354_v47 = vpack.c.bf16 %v290_v44, %v290_v44  ;;  %v7683_v44 = vld [vmem:[%s8070_s8 + $0x768] sm:$0xff]  }
  0xa5   : > { %6878 = vmatpush3.bf16.msra.mxu1 %v7594_v48  ;;  %6857 = vmatprep.subr.bf16.mxu0 %v7595_v49  ;;  %v356_v48 = vpack.c.bf16 %v292_v45, %v292_v45  ;;  %v7643_v49 = vld [vmem:[%s8070_s8 + $0x678] sm:$0xff]   ;;  %v7684_v45 = vld [vmem:[%s8070_s8 + $0x7e8] sm:$0xff]  }
  0xa6   : > { %6879 = vmatprep.subr.bf16.mxu1 %v7596_v50  ;;  %v7644_v50 = vld [vmem:[%s8070_s8 + $0x6f8] sm:$0xff]  }
  0xa8   : > { %6858 = vmatpush3.bf16.msra.mxu0 %v7597_v51  ;;  %v7645_v51 = vld [vmem:[%s8070_s8 + $0x638] sm:$0xff]  }
  0xa9   : > { %6880 = vmatpush3.bf16.msra.mxu1 %v7598_v52  ;;  %6859 = vmatprep.subr.bf16.mxu0 %v7599_v53  ;;  %v7646_v52 = vld [vmem:[%s8070_s8 + $0x6b8] sm:$0xff]   ;;  %v7647_v53 = vld [vmem:[%s8070_s8 + $0x670] sm:$0xff]  }
  0xaa   : > { %6881 = vmatprep.subr.bf16.mxu1 %v7600_v54  ;;  %v7648_v54 = vld [vmem:[%s8070_s8 + $0x6f0] sm:$0xff]  }
  0xac   : > { %6860 = vmatpush3.bf16.msra.mxu0 %v7601_v55  ;;  %v7649_v55 = vld [vmem:[%s8070_s8 + $0x630] sm:$0xff]  }
  0xad   : > { %6882 = vmatpush3.bf16.msra.mxu1 %v7602_v56  ;;  %6861 = vmatprep.subr.bf16.mxu0 %v7603_v57  ;;  %v7650_v56 = vld [vmem:[%s8070_s8 + $0x6b0] sm:$0xff]   ;;  %v7651_v57 = vld [vmem:[%s8070_s8 + $0x668] sm:$0xff]  }
  0xae   : > { %6883 = vmatprep.subr.bf16.mxu1 %v7604_v58  ;;  %v7652_v58 = vld [vmem:[%s8070_s8 + $0x6e8] sm:$0xff]  }
  0xb0   : > { %6862 = vmatpush3.bf16.msra.mxu0 %v7605_v59  ;;  %v7653_v59 = vld [vmem:[%s8070_s8 + $0x628] sm:$0xff]  }
  0xb1   : > { %6884 = vmatpush3.bf16.msra.mxu1 %v7606_v60  ;;  %6863 = vmatprep.subr.bf16.mxu0 %v7607_v61  ;;  %v7654_v60 = vld [vmem:[%s8070_s8 + $0x6a8] sm:$0xff]   ;;  %v7655_v61 = vld [vmem:[%s8070_s8 + $0x660] sm:$0xff]  }
  0xb2   : > { %6885 = vmatprep.subr.bf16.mxu1 %v7608_v62  ;;  %v7656_v62 = vld [vmem:[%s8070_s8 + $0x6e0] sm:$0xff]  }
  0xb4   : > { %6864 = vmatpush3.bf16.msra.mxu0 %v7609_v63  ;;  %v7657_v63 = vld [vmem:[%s8070_s8 + $0x620] sm:$0xff]  }
  0xb5   : > { %6886 = vmatpush3.bf16.msra.mxu1 %v7610_v0  ;;  %6893 = vmatprep.subr.bf16.mxu0 %v7611_v9  ;;  %v7658_v0 = vld [vmem:[%s8070_s8 + $0x6a0] sm:$0xff]   ;;  %v7667_v9 = vld [vmem:[%s8070_s8 + $0x648] sm:$0xff]  }
  0xb6   : > { %6915 = vmatprep.subr.bf16.mxu1 %v7612_v10  ;;  %v7668_v10 = vld [vmem:[%s8070_s8 + $0x6c8] sm:$0xff]  }
  0xb7   : > { %4847 = vmatmul.mubr.bf16.vlgmr.msra.gmra.mxu0 %v350_v7  ;;  %v7665_v7 = vld [vmem:[%s8070_s8 + $0x610] sm:$0xff]  }
  0xb8   : > { %4887 = vmatmul.mubr.bf16.vlgmr.msra.gmra.mxu1 %v352_v8  ;;  %6894 = vmatpush3.bf16.msra.mxu0 %v7613_v11  ;;  %v7666_v8 = vld [vmem:[%s8070_s8 + $0x690] sm:$0xff]   ;;  %v7669_v11 = vld [vmem:[%s8070_s8 + $0x608] sm:$0xff]  }
  0xb9   : > { %6916 = vmatpush3.bf16.msra.mxu1 %v7614_v12  ;;  %6895 = vmatprep.subr.bf16.mxu0 %v7615_v13  ;;  %v7670_v12 = vld [vmem:[%s8070_s8 + $0x688] sm:$0xff]   ;;  %v7671_v13 = vld [vmem:[%s8070_s8 + $0x640] sm:$0xff]  }
  0xba   : > { %6917 = vmatprep.subr.bf16.mxu1 %v7616_v14  ;;  %4926 = vmatprep.mubr.bf16.mxu0 %v355_v42  ;;  %v7681_v42 = vld [vmem:[%s8070_s8 + $0x730] sm:$0xff]  }
  0xbb   : > { %4966 = vmatprep.mubr.bf16.mxu1 %v357_v46  ;;  %v7685_v46 = vld [vmem:[%s8070_s8 + $0x728] sm:$0xff]  }
  0xbc   : > { %6896 = vmatpush3.bf16.msra.mxu0 %v7617_v15 }
  0xbd   : > { %6918 = vmatpush3.bf16.msra.mxu1 %v7618_v16  ;;  %6897 = vmatprep.subr.bf16.mxu0 %v7619_v17  ;;  %v7672_v16 = vld [vmem:[%s8070_s8 + $0x6c0] sm:$0xff]  }
  0xbe   : > { %6919 = vmatprep.subr.bf16.mxu1 %v7620_v18  ;;  %v7673_v17 = vld [vmem:[%s8070_s8 + $0x600] sm:$0xff]  }
  0xc0   : > { %6898 = vmatpush3.bf16.msra.mxu0 %v7621_v19 }
  0xc1   : > { %6920 = vmatpush3.bf16.msra.mxu1 %v7622_v20  ;;  %6899 = vmatprep.subr.bf16.mxu0 %v7623_v21  ;;  %v7674_v20 = vld [vmem:[%s8070_s8 + $0x680] sm:$0xff]  }
  0xc2   : > { %6921 = vmatprep.subr.bf16.mxu1 %v7624_v22 }
  0xc4   : > { %6900 = vmatpush3.bf16.msra.mxu0 %v7625_v23  ;;  %v295_v23 = vld [vmem:[%s8065_s28 + $0xc8] sm:$0xff] }
  0xc5   : > { %6922 = vmatpush3.bf16.msra.mxu1 %v7626_v24  ;;  %6901 = vmatprep.subr.bf16.mxu0 %v7627_v25  ;;  %v297_v24 = vld [vmem:[%s8065_s28 + $0xd8] sm:$0xff]  ;;  %v294_v25 = vld [vmem:[%s8065_s28 + $0xc0] sm:$0xff] }
  0xc6   : > { %6923 = vmatprep.subr.bf16.mxu1 %v7628_v26 }
  0xc8   : > { %6902 = vmatpush3.bf16.msra.mxu0 %v7629_v27 }
  0xc9   : > { %6924 = vmatpush3.bf16.msra.mxu1 %v7630_v28  ;;  %6903 = vmatprep.subr.bf16.mxu0 %v7631_v29  ;;  %v359_v28 = vpack.c.bf16 %v295_v23, %v295_v23  ;;  %v361_v29 = vpack.c.bf16 %v297_v24, %v297_v24  ;;  %v7708_v23 = vld [vmem:[%s8070_s8 + $0x8f8] sm:$0xff]  }
  0xca   : > { %6925 = vmatprep.subr.bf16.mxu1 %v7632_v30  ;;  %v358_v30 = vpack.c.bf16 %v294_v25, %v294_v25 }
  0xcc   : > { %6904 = vmatpush3.bf16.msra.mxu0 %v7633_v31  ;;  %v296_v31 = vld [vmem:[%s8065_s28 + $0xd0] sm:$0xff] }
  0xcd   : > { %6926 = vmatpush3.bf16.msra.mxu1 %v7634_v32  ;;  %6905 = vmatprep.subr.bf16.mxu0 %v7635_v33  ;;  %v360_v33 = vpack.c.bf16 %v296_v31, %v296_v31  ;;  %v7714_v31 = vld [vmem:[%s8070_s8 + $0x8b0] sm:$0xff]  }
  0xce   : > { %6927 = vmatprep.subr.bf16.mxu1 %v7636_v34  ;;  %v7675_v34 = vld [vmem:[%s8070_s8 + $0x778] sm:$0xff]  }
  0xd0   : > { %6906 = vmatpush3.bf16.msra.mxu0 %v7637_v35 }
  0xd1   : > { %6928 = vmatpush3.bf16.msra.mxu1 %v7638_v36  ;;  %6907 = vmatprep.subr.bf16.mxu0 %v7639_v37  ;;  %v7676_v37 = vld [vmem:[%s8070_s8 + $0x7f8] sm:$0xff]  }
  0xd2   : > { %6929 = vmatprep.subr.bf16.mxu1 %v7640_v38  ;;  %v7677_v38 = vld [vmem:[%s8070_s8 + $0x738] sm:$0xff]  }
  0xd4   : > { %6908 = vmatpush3.bf16.msra.mxu0 %v7641_v39  ;;  %v7678_v39 = vld [vmem:[%s8070_s8 + $0x7b8] sm:$0xff]  }
  0xd5   : > { %6930 = vmatpush3.bf16.msra.mxu1 %v7642_v40  ;;  %6937 = vmatprep.subr.bf16.mxu0 %v7643_v49  ;;  %v7679_v40 = vld [vmem:[%s8070_s8 + $0x770] sm:$0xff]   ;;  %v7688_v49 = vld [vmem:[%s8070_s8 + $0x7e0] sm:$0xff]  }
  0xd6   : > { %6959 = vmatprep.subr.bf16.mxu1 %v7644_v50  ;;  %v7689_v50 = vld [vmem:[%s8070_s8 + $0x720] sm:$0xff]  }
  0xd7   : > { %4927 = vmatmul.mubr.bf16.vlgmr.msra.gmra.mxu0 %v354_v47  ;;  %v7686_v47 = vld [vmem:[%s8070_s8 + $0x7a8] sm:$0xff]  }
  0xd8   : > { %4967 = vmatmul.mubr.bf16.vlgmr.msra.gmra.mxu1 %v356_v48  ;;  %6938 = vmatpush3.bf16.msra.mxu0 %v7645_v51  ;;  %v7687_v48 = vld [vmem:[%s8070_s8 + $0x760] sm:$0xff]  }
  0xd9   : > { %6960 = vmatpush3.bf16.msra.mxu1 %v7646_v52  ;;  %6939 = vmatprep.subr.bf16.mxu0 %v7647_v53  ;;  %v7690_v51 = vld [vmem:[%s8070_s8 + $0x7a0] sm:$0xff]   ;;  %v7691_v52 = vld [vmem:[%s8070_s8 + $0x758] sm:$0xff]  }
  0xda   : > { %6961 = vmatprep.subr.bf16.mxu1 %v7648_v54  ;;  %5006 = vmatprep.mubr.bf16.mxu0 %v359_v28  ;;  %v7692_v53 = vld [vmem:[%s8070_s8 + $0x7d8] sm:$0xff]   ;;  %v7711_v28 = vld [vmem:[%s8070_s8 + $0x870] sm:$0xff]  }
  0xdb   : > { %5046 = vmatprep.mubr.bf16.mxu1 %v361_v29  ;;  %v7693_v54 = vld [vmem:[%s8070_s8 + $0x718] sm:$0xff]   ;;  %v7712_v29 = vld [vmem:[%s8070_s8 + $0x8f0] sm:$0xff]  }
  0xdc   : > { %6940 = vmatpush3.bf16.msra.mxu0 %v7649_v55  ;;  %v7694_v55 = vld [vmem:[%s8070_s8 + $0x798] sm:$0xff]  }
  0xdd   : > { %6962 = vmatpush3.bf16.msra.mxu1 %v7650_v56  ;;  %6941 = vmatprep.subr.bf16.mxu0 %v7651_v57  ;;  %v7695_v56 = vld [vmem:[%s8070_s8 + $0x750] sm:$0xff]  }
  0xde   : > { %6963 = vmatprep.subr.bf16.mxu1 %v7652_v58  ;;  %v7696_v57 = vld [vmem:[%s8070_s8 + $0x7d0] sm:$0xff]  }
  0xdf   : > { %v7697_v58 = vld [vmem:[%s8070_s8 + $0x710] sm:$0xff]  }
  0xe0   : > { %6942 = vmatpush3.bf16.msra.mxu0 %v7653_v59  ;;  %v7698_v59 = vld [vmem:[%s8070_s8 + $0x790] sm:$0xff]  }
  0xe1   : > { %6964 = vmatpush3.bf16.msra.mxu1 %v7654_v60  ;;  %6943 = vmatprep.subr.bf16.mxu0 %v7655_v61  ;;  %v7699_v60 = vld [vmem:[%s8070_s8 + $0x748] sm:$0xff]  }
  0xe2   : > { %6965 = vmatprep.subr.bf16.mxu1 %v7656_v62  ;;  %v7700_v61 = vld [vmem:[%s8070_s8 + $0x7c8] sm:$0xff]  }
  0xe3   : > { %v7701_v62 = vld [vmem:[%s8070_s8 + $0x708] sm:$0xff]  }
  0xe4   : > { %6944 = vmatpush3.bf16.msra.mxu0 %v7657_v63  ;;  %v7702_v63 = vld [vmem:[%s8070_s8 + $0x788] sm:$0xff]  }
  0xe5   : > { %6966 = vmatpush3.bf16.msra.mxu1 %v7658_v0  ;;  %6945 = vmatprep.subr.bf16.mxu0 %v7659_v1  ;;  %v7703_v1 = vld [vmem:[%s8070_s8 + $0x740] sm:$0xff]  }
  0xe6   : > { %6967 = vmatprep.subr.bf16.mxu1 %v7660_v2 }
  0xe8   : > { %6946 = vmatpush3.bf16.msra.mxu0 %v7661_v3  ;;  %v7704_v3 = vld [vmem:[%s8070_s8 + $0x7c0] sm:$0xff]  }
  0xe9   : > { %6968 = vmatpush3.bf16.msra.mxu1 %v7662_v4  ;;  %6947 = vmatprep.subr.bf16.mxu0 %v7663_v5  ;;  %v7705_v5 = vld [vmem:[%s8070_s8 + $0x700] sm:$0xff]  }
  0xea   : > { %6969 = vmatprep.subr.bf16.mxu1 %v7664_v6 }
  0xec   : > { %6948 = vmatpush3.bf16.msra.mxu0 %v7665_v7 }
  0xed   : > { %6970 = vmatpush3.bf16.msra.mxu1 %v7666_v8  ;;  %6949 = vmatprep.subr.bf16.mxu0 %v7667_v9  ;;  %v7706_v8 = vld [vmem:[%s8070_s8 + $0x780] sm:$0xff]   ;;  %v299_v9 = vld [vmem:[%s8065_s28 + $0xe8] sm:$0xff] }
  0xee   : > { %6971 = vmatprep.subr.bf16.mxu1 %v7668_v10  ;;  %v301_v10 = vld [vmem:[%s8065_s28 + $0xf8] sm:$0xff] }
  0xf0   : > { %6950 = vmatpush3.bf16.msra.mxu0 %v7669_v11 }
  0xf1   : > { %6972 = vmatpush3.bf16.msra.mxu1 %v7670_v12  ;;  %6951 = vmatprep.subr.bf16.mxu0 %v7671_v13  ;;  %v363_v13 = vpack.c.bf16 %v299_v9, %v299_v9  ;;  %v7739_v9 = vld [vmem:[%s8070_s8 + $0x978] sm:$0xff]  }
  0xf2   : > { %6973 = vmatprep.subr.bf16.mxu1 %v7672_v16  ;;  %v300_v16 = vld [vmem:[%s8065_s28 + $0xf0] sm:$0xff] }
  0xf4   : > { %6952 = vmatpush3.bf16.msra.mxu0 %v7673_v17 }
  0xf5   : > { %6974 = vmatpush3.bf16.msra.mxu1 %v7674_v20  ;;  %6981 = vmatprep.subr.bf16.mxu0 %v7675_v34  ;;  %v364_v20 = vpack.c.bf16 %v300_v16, %v300_v16  ;;  %v7717_v34 = vld [vmem:[%s8070_s8 + $0x828] sm:$0xff]   ;;  %v7743_v16 = vld [vmem:[%s8070_s8 + $0x970] sm:$0xff]  }
  0xf6   : > { %7003 = vmatprep.subr.bf16.mxu1 %v7676_v37  ;;  %v7720_v37 = vld [vmem:[%s8070_s8 + $0x8e0] sm:$0xff]  }
  0xf7   : > { %v6689_v14 = vpop.f32.mrf.mxu0  ;;  %5007 = vmatmul.mubr.bf16.vlgmr.msra.gmra.mxu0 %v358_v30  ;;  %v7713_v30 = vld [vmem:[%s8070_s8 + $0x830] sm:$0xff]  }
  0xf8   : > { %v6711_v15 = vpop.f32.mrf.mxu1  ;;  %5047 = vmatmul.mubr.bf16.vlgmr.msra.gmra.mxu1 %v360_v33  ;;  %6982 = vmatpush3.bf16.msra.mxu0 %v7677_v38  ;;  %v7716_v33 = vld [vmem:[%s8070_s8 + $0x8e8] sm:$0xff]   ;;  %v7721_v38 = vld [vmem:[%s8070_s8 + $0x820] sm:$0xff]  }
  0xf9   : > { %v6690_v18 = vpop.f32.mrf.mxu0  ;;  %7004 = vmatpush3.bf16.msra.mxu1 %v7678_v39  ;;  %6983 = vmatprep.subr.bf16.mxu0 %v7679_v40  ;;  %v7722_v39 = vld [vmem:[%s8070_s8 + $0x8a0] sm:$0xff]   ;;  %v7723_v40 = vld [vmem:[%s8070_s8 + $0x858] sm:$0xff]  }
  0xfa   : > { %v6712_v19 = vpop.f32.mrf.mxu1  ;;  %v6691_v21 = vadd.f32 %v6690_v18, %v6689_v14  ;;  %7005 = vmatprep.subr.bf16.mxu1 %v7680_v41  ;;  %v365_v14 = vpack.c.bf16 %v301_v10, %v301_v10  ;;  %5086 = vmatprep.mubr.bf16.mxu0 %v363_v13  ;;  %v7724_v41 = vld [vmem:[%s8070_s8 + $0x8d8] sm:$0xff]  }
  0xfb   : > { %v6713_v22 = vadd.f32 %v6712_v19, %v6711_v15  ;;  %v6692_v26 = vpop.f32.mrf.mxu0  ;;  %v298_v15 = vld [vmem:[%s8065_s28 + $0xe0] sm:$0xff] }
  0xfc   : > { %v6714_v27 = vpop.f32.mrf.mxu1  ;;  %6984 = vmatpush3.bf16.msra.mxu0 %v7681_v42  ;;  %v362_v19 = vpack.c.bf16 %v298_v15, %v298_v15  ;;  %5126 = vmatprep.mubr.bf16.mxu1 %v365_v14  ;;  %v7709_v26 = vld [vmem:[%s8070_s8 + $0x838] sm:$0xff]  }
  0xfd   : > { %v8325_v32 = vadd.f32 %v6713_v22, %v6691_v21  ;;  %v6693_v35 = vpop.f32.mrf.mxu0  ;;  %7006 = vmatpush3.bf16.msra.mxu1 %v7682_v43  ;;  %6985 = vmatprep.subr.bf16.mxu0 %v7683_v44  ;;  %v7707_v21 = vld [vmem:[%s8070_s8 + $0x878] sm:$0xff]   ;;  %v7727_v44 = vld [vmem:[%s8070_s8 + $0x850] sm:$0xff]  }
  0xfe   : > { %v6715_v36 = vpop.f32.mrf.mxu1  ;;  %7007 = vmatprep.subr.bf16.mxu1 %v7684_v45  ;;  %v7710_v27 = vld [vmem:[%s8070_s8 + $0x8b8] sm:$0xff]   ;;  %v7718_v35 = vld [vmem:[%s8070_s8 + $0x8a8] sm:$0xff]   ;;  %v7728_v45 = vld [vmem:[%s8070_s8 + $0x8d0] sm:$0xff]  }
  0xff   : > { %v7719_v36 = vld [vmem:[%s8070_s8 + $0x860] sm:$0xff]   ;;  %v7725_v42 = vld [vmem:[%s8070_s8 + $0x818] sm:$0xff]  }
 0x100   : > { %6986 = vmatpush3.bf16.msra.mxu0 %v7685_v46  ;;  %v7726_v43 = vld [vmem:[%s8070_s8 + $0x898] sm:$0xff]   ;;  %v7729_v46 = vld [vmem:[%s8070_s8 + $0x810] sm:$0xff]  }
 0x101   : > { %7008 = vmatpush3.bf16.msra.mxu1 %v7686_v47  ;;  %6987 = vmatprep.subr.bf16.mxu0 %v7687_v48  ;;  %v7730_v47 = vld [vmem:[%s8070_s8 + $0x890] sm:$0xff]   ;;  %v7731_v48 = vld [vmem:[%s8070_s8 + $0x848] sm:$0xff]   ;;  %v7741_v14 = vld [vmem:[%s8070_s8 + $0x938] sm:$0xff]  }
 0x102   : > { %7009 = vmatprep.subr.bf16.mxu1 %v7688_v49  ;;  %v7732_v49 = vld [vmem:[%s8070_s8 + $0x8c8] sm:$0xff]   ;;  %v7742_v15 = vld [vmem:[%s8070_s8 + $0x9b8] sm:$0xff]  }
 0x104   : > { %6988 = vmatpush3.bf16.msra.mxu0 %v7689_v50  ;;  %v7733_v50 = vld [vmem:[%s8070_s8 + $0x808] sm:$0xff]  }
 0x105   : > { %7010 = vmatpush3.bf16.msra.mxu1 %v7690_v51  ;;  %6989 = vmatprep.subr.bf16.mxu0 %v7691_v52  ;;  %v7734_v51 = vld [vmem:[%s8070_s8 + $0x888] sm:$0xff]  }
 0x106   : > { %7011 = vmatprep.subr.bf16.mxu1 %v7692_v53  ;;  %v7735_v53 = vld [vmem:[%s8070_s8 + $0x840] sm:$0xff]  }
 0x108   : > { %6990 = vmatpush3.bf16.msra.mxu0 %v7693_v54 }
 0x109   : > { %7012 = vmatpush3.bf16.msra.mxu1 %v7694_v55  ;;  %6991 = vmatprep.subr.bf16.mxu0 %v7695_v56  ;;  %v7736_v55 = vld [vmem:[%s8070_s8 + $0x8c0] sm:$0xff]  }
 0x10a   : > { %7013 = vmatprep.subr.bf16.mxu1 %v7696_v57  ;;  %v7737_v57 = vld [vmem:[%s8070_s8 + $0x800] sm:$0xff]  }
 0x10c   : > { %6992 = vmatpush3.bf16.msra.mxu0 %v7697_v58 }
 0x10d   : > { %7014 = vmatpush3.bf16.msra.mxu1 %v7698_v59  ;;  %6993 = vmatprep.subr.bf16.mxu0 %v7699_v60  ;;  %v7738_v60 = vld [vmem:[%s8070_s8 + $0x880] sm:$0xff]  }
 0x10e   : > { %7015 = vmatprep.subr.bf16.mxu1 %v7700_v61  ;;  %v303_v61 = vld [vmem:[%s8065_s28 + $0x108] sm:$0xff] }
 0x110   : > { %6994 = vmatpush3.bf16.msra.mxu0 %v7701_v62 }
 0x111   : > { %7016 = vmatpush3.bf16.msra.mxu1 %v7702_v63  ;;  %6995 = vmatprep.subr.bf16.mxu0 %v7703_v1  ;;  %v305_v1 = vld [vmem:[%s8065_s28 + $0x118] sm:$0xff] }
 0x112   : > { %7017 = vmatprep.subr.bf16.mxu1 %v7704_v3  ;;  %v304_v3 = vld [vmem:[%s8065_s28 + $0x110] sm:$0xff] }
 0x114   : > { %6996 = vmatpush3.bf16.msra.mxu0 %v7705_v5 }
 0x115   : > { %7018 = vmatpush3.bf16.msra.mxu1 %v7706_v8  ;;  %7025 = vmatprep.subr.bf16.mxu0 %v7707_v21  ;;  %v368_v8 = vpack.c.bf16 %v304_v3, %v304_v3  ;;  %v7748_v21 = vld [vmem:[%s8070_s8 + $0x9e8] sm:$0xff]   ;;  %v7774_v3 = vld [vmem:[%s8070_s8 + $0xab8] sm:$0xff]  }
 0x116   : > { %7047 = vmatprep.subr.bf16.mxu1 %v7708_v23  ;;  %v7750_v23 = vld [vmem:[%s8070_s8 + $0x9a8] sm:$0xff]  }
 0x117   : > { %v6733_v0 = vpop.f32.mrf.mxu0  ;;  %5087 = vmatmul.mubr.bf16.vlgmr.msra.gmra.mxu0 %v362_v19  ;;  %v7746_v19 = vld [vmem:[%s8070_s8 + $0x9b0] sm:$0xff]  }
 0x118   : > { %v6755_v2 = vpop.f32.mrf.mxu1  ;;  %5127 = vmatmul.mubr.bf16.vlgmr.msra.gmra.mxu1 %v364_v20  ;;  %7026 = vmatpush3.bf16.msra.mxu0 %v7709_v26  ;;  %v7747_v20 = vld [vmem:[%s8070_s8 + $0x968] sm:$0xff]   ;;  %v7753_v26 = vld [vmem:[%s8070_s8 + $0x920] sm:$0xff]  }
 0x119   : > { %v6734_v4 = vpop.f32.mrf.mxu0  ;;  %7048 = vmatpush3.bf16.msra.mxu1 %v7710_v27  ;;  %7027 = vmatprep.subr.bf16.mxu0 %v7711_v28  ;;  %v7754_v27 = vld [vmem:[%s8070_s8 + $0x9a0] sm:$0xff]   ;;  %v7755_v28 = vld [vmem:[%s8070_s8 + $0x958] sm:$0xff]  }
 0x11a   : > { %v6735_v6 = vadd.f32 %v6734_v4, %v6733_v0  ;;  %v6756_v7 = vpop.f32.mrf.mxu1  ;;  %7049 = vmatprep.subr.bf16.mxu1 %v7712_v29  ;;  %v367_v0 = vpack.c.bf16 %v303_v61, %v303_v61  ;;  %v7756_v29 = vld [vmem:[%s8070_s8 + $0x9d8] sm:$0xff]  }
 0x11b   : > { %v6757_v11 = vadd.f32 %v6756_v7, %v6755_v2  ;;  %v6736_v12 = vpop.f32.mrf.mxu0  ;;  %v302_v2 = vld [vmem:[%s8065_s28 + $0x100] sm:$0xff]  ;;  %v7771_v61 = vld [vmem:[%s8070_s8 + $0xa78] sm:$0xff]  }
 0x11c   : > { %v4609_v17 = vadd.f32 %v6735_v6, %v8325_v32  ;;  %v6758_v18 = vpop.f32.mrf.mxu1  ;;  %7028 = vmatpush3.bf16.msra.mxu0 %v7713_v30  ;;  %v7715_v32 = vld [vmem:[%s8070_s8 + $0x868] sm:$0xff]   ;;  %v369_v6 = vpack.c.bf16 %v305_v1, %v305_v1  ;;  %v366_v7 = vpack.c.bf16 %v302_v2, %v302_v2  ;;  %5166 = vmatprep.mubr.bf16.mxu0 %v367_v0  ;;  %v7757_v30 = vld [vmem:[%s8070_s8 + $0x918] sm:$0xff]  }
 0x11d   : > { %v6737_v22 = vpop.f32.mrf.mxu0  ;;  %7050 = vmatpush3.bf16.msra.mxu1 %v7714_v31  ;;  %7029 = vmatprep.subr.bf16.mxu0 %v7715_v32  ;;  %v7745_v18 = vld [vmem:[%s8070_s8 + $0x930] sm:$0xff]   ;;  %v7758_v31 = vld [vmem:[%s8070_s8 + $0x998] sm:$0xff]  }
 0x11e   : > { %v8366_v24 = vadd.f32 %v6757_v11, %v4609_v17  ;;  %v6759_v25 = vpop.f32.mrf.mxu1  ;;  %7051 = vmatprep.subr.bf16.mxu1 %v7716_v33  ;;  %v7740_v11 = vld [vmem:[%s8070_s8 + $0x9f8] sm:$0xff]   ;;  %5206 = vmatprep.mubr.bf16.mxu1 %v369_v6  ;;  %v7744_v17 = vld [vmem:[%s8070_s8 + $0x9f0] sm:$0xff]   ;;  %v7749_v22 = vld [vmem:[%s8070_s8 + $0x928] sm:$0xff]  }
 0x11f   : > { %v7752_v25 = vld [vmem:[%s8070_s8 + $0x9e0] sm:$0xff]   ;;  %v7759_v32 = vld [vmem:[%s8070_s8 + $0x950] sm:$0xff]   ;;  %v7772_v0 = vld [vmem:[%s8070_s8 + $0xaf8] sm:$0xff]  }
 0x120   : > { %7030 = vmatpush3.bf16.msra.mxu0 %v7717_v34  ;;  %v7760_v33 = vld [vmem:[%s8070_s8 + $0x9d0] sm:$0xff]   ;;  %v7773_v2 = vld [vmem:[%s8070_s8 + $0xa38] sm:$0xff]  }
 0x121   : > { %7052 = vmatpush3.bf16.msra.mxu1 %v7718_v35  ;;  %7031 = vmatprep.subr.bf16.mxu0 %v7719_v36  ;;  %v7761_v34 = vld [vmem:[%s8070_s8 + $0x910] sm:$0xff]   ;;  %v7763_v36 = vld [vmem:[%s8070_s8 + $0x948] sm:$0xff]  }
 0x122   : > { %7053 = vmatprep.subr.bf16.mxu1 %v7720_v37  ;;  %v7762_v35 = vld [vmem:[%s8070_s8 + $0x990] sm:$0xff]   ;;  %v7764_v37 = vld [vmem:[%s8070_s8 + $0x9c8] sm:$0xff]  }
 0x123   : > { %v7777_v6 = vld [vmem:[%s8070_s8 + $0xa30] sm:$0xff]  }
 0x124   : > { %7032 = vmatpush3.bf16.msra.mxu0 %v7721_v38  ;;  %v7765_v38 = vld [vmem:[%s8070_s8 + $0x908] sm:$0xff]  }
 0x125   : > { %7054 = vmatpush3.bf16.msra.mxu1 %v7722_v39  ;;  %7033 = vmatprep.subr.bf16.mxu0 %v7723_v40  ;;  %v7766_v39 = vld [vmem:[%s8070_s8 + $0x988] sm:$0xff]   ;;  %v7767_v40 = vld [vmem:[%s8070_s8 + $0x940] sm:$0xff]  }
 0x126   : > { %7055 = vmatprep.subr.bf16.mxu1 %v7724_v41 }
 0x128   : > { %7034 = vmatpush3.bf16.msra.mxu0 %v7725_v42 }
 0x129   : > { %7056 = vmatpush3.bf16.msra.mxu1 %v7726_v43  ;;  %7035 = vmatprep.subr.bf16.mxu0 %v7727_v44  ;;  %v7768_v43 = vld [vmem:[%s8070_s8 + $0x9c0] sm:$0xff]  }
 0x12a   : > { %7057 = vmatprep.subr.bf16.mxu1 %v7728_v45  ;;  %v7769_v44 = vld [vmem:[%s8070_s8 + $0x900] sm:$0xff]  }
 0x12c   : > { %7036 = vmatpush3.bf16.msra.mxu0 %v7729_v46 }
 0x12d   : > { %7058 = vmatpush3.bf16.msra.mxu1 %v7730_v47  ;;  %7037 = vmatprep.subr.bf16.mxu0 %v7731_v48  ;;  %v7770_v47 = vld [vmem:[%s8070_s8 + $0x980] sm:$0xff]  }
 0x12e   : > { %7059 = vmatprep.subr.bf16.mxu1 %v7732_v49 }
 0x130   : > { %7038 = vmatpush3.bf16.msra.mxu0 %v7733_v50  ;;  %v307_v50 = vld [vmem:[%s8065_s28 + $0x128] sm:$0xff] }
 0x131   : > { %7060 = vmatpush3.bf16.msra.mxu1 %v7734_v51  ;;  %7039 = vmatprep.subr.bf16.mxu0 %v7735_v53  ;;  %v309_v51 = vld [vmem:[%s8065_s28 + $0x138] sm:$0xff] }
 0x132   : > { %7061 = vmatprep.subr.bf16.mxu1 %v7736_v55  ;;  %v371_v55 = vpack.c.bf16 %v307_v50, %v307_v50 }
 0x134   : > { %7040 = vmatpush3.bf16.msra.mxu0 %v7737_v57 }
 0x135   : > { %7062 = vmatpush3.bf16.msra.mxu1 %v7738_v60  ;;  %7069 = vmatprep.subr.bf16.mxu0 %v7739_v9  ;;  %v7780_v9 = vld [vmem:[%s8070_s8 + $0xae8] sm:$0xff]  }
 0x136   : > { %7091 = vmatprep.subr.bf16.mxu1 %v7740_v11  ;;  %v7782_v11 = vld [vmem:[%s8070_s8 + $0xaa8] sm:$0xff]  }
 0x137   : > { %v6777_v52 = vpop.f32.mrf.mxu0  ;;  %5167 = vmatmul.mubr.bf16.vlgmr.msra.gmra.mxu0 %v366_v7  ;;  %v7778_v7 = vld [vmem:[%s8070_s8 + $0xab0] sm:$0xff]  }
 0x138   : > { %v6799_v54 = vpop.f32.mrf.mxu1  ;;  %5207 = vmatmul.mubr.bf16.vlgmr.msra.gmra.mxu1 %v368_v8  ;;  %7070 = vmatpush3.bf16.msra.mxu0 %v7741_v14  ;;  %v7779_v8 = vld [vmem:[%s8070_s8 + $0xa68] sm:$0xff]   ;;  %v7785_v14 = vld [vmem:[%s8070_s8 + $0xa20] sm:$0xff]  }
 0x139   : > { %v6778_v56 = vpop.f32.mrf.mxu0  ;;  %7092 = vmatpush3.bf16.msra.mxu1 %v7742_v15  ;;  %7071 = vmatprep.subr.bf16.mxu0 %v7743_v16  ;;  %v7786_v15 = vld [vmem:[%s8070_s8 + $0xaa0] sm:$0xff]   ;;  %v7787_v16 = vld [vmem:[%s8070_s8 + $0xa58] sm:$0xff]  }
 0x13a   : > { %v6779_v58 = vadd.f32 %v6778_v56, %v6777_v52  ;;  %v6800_v59 = vpop.f32.mrf.mxu1  ;;  %7093 = vmatprep.subr.bf16.mxu1 %v7744_v17  ;;  %v306_v52 = vld [vmem:[%s8065_s28 + $0x120] sm:$0xff]  ;;  %v373_v56 = vpack.c.bf16 %v309_v51, %v309_v51  ;;  %5246 = vmatprep.mubr.bf16.mxu0 %v371_v55  ;;  %v7788_v17 = vld [vmem:[%s8070_s8 + $0xad8] sm:$0xff]  }
 0x13b   : > { %v6801_v62 = vadd.f32 %v6800_v59, %v6799_v54  ;;  %v6780_v63 = vpop.f32.mrf.mxu0  ;;  %v370_v57 = vpack.c.bf16 %v306_v52, %v306_v52  ;;  %v7804_v51 = vld [vmem:[%s8070_s8 + $0xbf8] sm:$0xff]  }
 0x13c   : > { %v4689_v4 = vadd.f32 %v6779_v58, %v8366_v24  ;;  %v6802_v5 = vpop.f32.mrf.mxu1  ;;  %7072 = vmatpush3.bf16.msra.mxu0 %v7745_v18  ;;  %v7751_v24 = vld [vmem:[%s8070_s8 + $0x960] sm:$0xff]   ;;  %v308_v58 = vld [vmem:[%s8065_s28 + $0x130] sm:$0xff]  ;;  %5286 = vmatprep.mubr.bf16.mxu1 %v373_v56  ;;  %v7789_v18 = vld [vmem:[%s8070_s8 + $0xa18] sm:$0xff]  }
 0x13d   : > { %v6781_v10 = vpop.f32.mrf.mxu0  ;;  %7094 = vmatpush3.bf16.msra.mxu1 %v7746_v19  ;;  %7073 = vmatprep.subr.bf16.mxu0 %v7747_v20  ;;  %v372_v60 = vpack.c.bf16 %v308_v58, %v308_v58  ;;  %v7776_v5 = vld [vmem:[%s8070_s8 + $0xaf0] sm:$0xff]   ;;  %v7790_v19 = vld [vmem:[%s8070_s8 + $0xa98] sm:$0xff]  }
 0x13e   : > { %v8405_v12 = vadd.f32 %v6801_v62, %v4689_v4  ;;  %v6803_v13 = vpop.f32.mrf.mxu1  ;;  %7095 = vmatprep.subr.bf16.mxu1 %v7748_v21  ;;  %v7775_v4 = vld [vmem:[%s8070_s8 + $0xa70] sm:$0xff]   ;;  %v7781_v10 = vld [vmem:[%s8070_s8 + $0xa28] sm:$0xff]   ;;  %v7806_v55 = vld [vmem:[%s8070_s8 + $0xbb8] sm:$0xff]  }
 0x13f   : > { %v7784_v13 = vld [vmem:[%s8070_s8 + $0xae0] sm:$0xff]   ;;  %v7791_v20 = vld [vmem:[%s8070_s8 + $0xa50] sm:$0xff]  }
 0x140   : > { %7074 = vmatpush3.bf16.msra.mxu0 %v7749_v22  ;;  %v7792_v21 = vld [vmem:[%s8070_s8 + $0xad0] sm:$0xff]  }
 0x141   : > { %7096 = vmatpush3.bf16.msra.mxu1 %v7750_v23  ;;  %7075 = vmatprep.subr.bf16.mxu0 %v7751_v24  ;;  %v7793_v22 = vld [vmem:[%s8070_s8 + $0xa10] sm:$0xff]   ;;  %v7795_v24 = vld [vmem:[%s8070_s8 + $0xa48] sm:$0xff]  }
 0x142   : > { %7097 = vmatprep.subr.bf16.mxu1 %v7752_v25  ;;  %v7794_v23 = vld [vmem:[%s8070_s8 + $0xa90] sm:$0xff]   ;;  %v7796_v25 = vld [vmem:[%s8070_s8 + $0xac8] sm:$0xff]  }
 0x143   : > { %v7807_v56 = vld [vmem:[%s8070_s8 + $0xb70] sm:$0xff]  }
 0x144   : > { %7076 = vmatpush3.bf16.msra.mxu0 %v7753_v26  ;;  %v7797_v26 = vld [vmem:[%s8070_s8 + $0xa08] sm:$0xff]   ;;  %v7809_v58 = vld [vmem:[%s8070_s8 + $0xb30] sm:$0xff]  }
 0x145   : > { %7098 = vmatpush3.bf16.msra.mxu1 %v7754_v27  ;;  %7077 = vmatprep.subr.bf16.mxu0 %v7755_v28  ;;  %v7798_v27 = vld [vmem:[%s8070_s8 + $0xa88] sm:$0xff]  }
 0x146   : > { %7099 = vmatprep.subr.bf16.mxu1 %v7756_v29  ;;  %v7799_v29 = vld [vmem:[%s8070_s8 + $0xa40] sm:$0xff]  }
 0x148   : > { %7078 = vmatpush3.bf16.msra.mxu0 %v7757_v30 }
 0x149   : > { %7100 = vmatpush3.bf16.msra.mxu1 %v7758_v31  ;;  %7079 = vmatprep.subr.bf16.mxu0 %v7759_v32  ;;  %v7800_v31 = vld [vmem:[%s8070_s8 + $0xac0] sm:$0xff]  }
 0x14a   : > { %7101 = vmatprep.subr.bf16.mxu1 %v7760_v33  ;;  %v7801_v33 = vld [vmem:[%s8070_s8 + $0xa00] sm:$0xff]  }
 0x14c   : > { %7080 = vmatpush3.bf16.msra.mxu0 %v7761_v34 }
 0x14d   : > { %7102 = vmatpush3.bf16.msra.mxu1 %v7762_v35  ;;  %7081 = vmatprep.subr.bf16.mxu0 %v7763_v36  ;;  %v7802_v36 = vld [vmem:[%s8070_s8 + $0xa80] sm:$0xff]  }
 0x14e   : > { %7103 = vmatprep.subr.bf16.mxu1 %v7764_v37  ;;  %v311_v37 = vld [vmem:[%s8065_s28 + $0x148] sm:$0xff] }
 0x150   : > { %7082 = vmatpush3.bf16.msra.mxu0 %v7765_v38  ;;  %v313_v38 = vld [vmem:[%s8065_s28 + $0x158] sm:$0xff] }
 0x151   : > { %7104 = vmatpush3.bf16.msra.mxu1 %v7766_v39  ;;  %7083 = vmatprep.subr.bf16.mxu0 %v7767_v40 }
 0x152   : > { %7105 = vmatprep.subr.bf16.mxu1 %v7768_v43  ;;  %v310_v43 = vld [vmem:[%s8065_s28 + $0x140] sm:$0xff] }
 0x154   : > { %7084 = vmatpush3.bf16.msra.mxu0 %v7769_v44  ;;  %v312_v44 = vld [vmem:[%s8065_s28 + $0x150] sm:$0xff] }
 0x155   : > { %7106 = vmatpush3.bf16.msra.mxu1 %v7770_v47  ;;  %7113 = vmatprep.subr.bf16.mxu0 %v7771_v61  ;;  %v374_v47 = vpack.c.bf16 %v310_v43, %v310_v43  ;;  %v7812_v61 = vld [vmem:[%s8070_s8 + $0xbe8] sm:$0xff]   ;;  %v7838_v43 = vld [vmem:[%s8070_s8 + $0xcb8] sm:$0xff]  }
 0x156   : > { %7135 = vmatprep.subr.bf16.mxu1 %v7772_v0  ;;  %v7815_v0 = vld [vmem:[%s8070_s8 + $0xb60] sm:$0xff]  }
 0x157   : > { %v6821_v41 = vpop.f32.mrf.mxu0  ;;  %5247 = vmatmul.mubr.bf16.vlgmr.msra.gmra.mxu0 %v370_v57  ;;  %v7808_v57 = vld [vmem:[%s8070_s8 + $0xbf0] sm:$0xff]  }
 0x158   : > { %v6843_v42 = vpop.f32.mrf.mxu1  ;;  %5287 = vmatmul.mubr.bf16.vlgmr.msra.gmra.mxu1 %v372_v60  ;;  %7114 = vmatpush3.bf16.msra.mxu0 %v7773_v2  ;;  %v7811_v60 = vld [vmem:[%s8070_s8 + $0xb68] sm:$0xff]   ;;  %v7817_v2 = vld [vmem:[%s8070_s8 + $0xb20] sm:$0xff]  }
 0x159   : > { %v6822_v45 = vpop.f32.mrf.mxu0  ;;  %7136 = vmatpush3.bf16.msra.mxu1 %v7774_v3  ;;  %7115 = vmatprep.subr.bf16.mxu0 %v7775_v4  ;;  %v7818_v3 = vld [vmem:[%s8070_s8 + $0xba0] sm:$0xff]   ;;  %v7819_v4 = vld [vmem:[%s8070_s8 + $0xb58] sm:$0xff]  }
 0x15a   : > { %v6844_v46 = vpop.f32.mrf.mxu1  ;;  %v6823_v48 = vadd.f32 %v6822_v45, %v6821_v41  ;;  %7137 = vmatprep.subr.bf16.mxu1 %v7776_v5  ;;  %v375_v41 = vpack.c.bf16 %v311_v37, %v311_v37  ;;  %v7820_v5 = vld [vmem:[%s8070_s8 + $0xbd8] sm:$0xff]  }
 0x15b   : > { %v6845_v49 = vadd.f32 %v6844_v46, %v6843_v42  ;;  %v6824_v53 = vpop.f32.mrf.mxu0  ;;  %v377_v42 = vpack.c.bf16 %v313_v38, %v313_v38  ;;  %v7835_v37 = vld [vmem:[%s8070_s8 + $0xc78] sm:$0xff]  }
 0x15c   : > { %v6846_v54 = vpop.f32.mrf.mxu1  ;;  %v4769_v59 = vadd.f32 %v6823_v48, %v8405_v12  ;;  %7116 = vmatpush3.bf16.msra.mxu0 %v7777_v6  ;;  %v7783_v12 = vld [vmem:[%s8070_s8 + $0xa60] sm:$0xff]   ;;  %v376_v48 = vpack.c.bf16 %v312_v44, %v312_v44  ;;  %5326 = vmatprep.mubr.bf16.mxu0 %v375_v41  ;;  %v7821_v6 = vld [vmem:[%s8070_s8 + $0xb18] sm:$0xff]   ;;  %v7839_v44 = vld [vmem:[%s8070_s8 + $0xc70] sm:$0xff]  }
 0x15d   : > { %v6825_v62 = vpop.f32.mrf.mxu0  ;;  %7138 = vmatpush3.bf16.msra.mxu1 %v7778_v7  ;;  %7117 = vmatprep.subr.bf16.mxu0 %v7779_v8  ;;  %v7805_v54 = vld [vmem:[%s8070_s8 + $0xb38] sm:$0xff]   ;;  %v7823_v8 = vld [vmem:[%s8070_s8 + $0xb50] sm:$0xff]  }
 0x15e   : > { %v6847_v63 = vpop.f32.mrf.mxu1  ;;  %v8444_v1 = vadd.f32 %v6845_v49, %v4769_v59  ;;  %7139 = vmatprep.subr.bf16.mxu1 %v7780_v9  ;;  %v7803_v49 = vld [vmem:[%s8070_s8 + $0xb78] sm:$0xff]   ;;  %5366 = vmatprep.mubr.bf16.mxu1 %v377_v42  ;;  %v7810_v59 = vld [vmem:[%s8070_s8 + $0xbb0] sm:$0xff]   ;;  %v7813_v62 = vld [vmem:[%s8070_s8 + $0xb28] sm:$0xff]  }
 0x15f   : > { %v7814_v63 = vld [vmem:[%s8070_s8 + $0xba8] sm:$0xff]   ;;  %v7822_v7 = vld [vmem:[%s8070_s8 + $0xb98] sm:$0xff]   ;;  %v7824_v9 = vld [vmem:[%s8070_s8 + $0xbd0] sm:$0xff]  }
 0x160   : > { %7118 = vmatpush3.bf16.msra.mxu0 %v7781_v10  ;;  %v7825_v10 = vld [vmem:[%s8070_s8 + $0xb10] sm:$0xff]   ;;  %v7837_v42 = vld [vmem:[%s8070_s8 + $0xc38] sm:$0xff]  }
 0x161   : > { %7140 = vmatpush3.bf16.msra.mxu1 %v7782_v11  ;;  %7119 = vmatprep.subr.bf16.mxu0 %v7783_v12  ;;  %v7826_v11 = vld [vmem:[%s8070_s8 + $0xb90] sm:$0xff]   ;;  %v7827_v12 = vld [vmem:[%s8070_s8 + $0xb48] sm:$0xff]  }
 0x162   : > { %7141 = vmatprep.subr.bf16.mxu1 %v7784_v13  ;;  %v7828_v13 = vld [vmem:[%s8070_s8 + $0xbc8] sm:$0xff]  }
 0x164   : > { %7120 = vmatpush3.bf16.msra.mxu0 %v7785_v14  ;;  %v7829_v14 = vld [vmem:[%s8070_s8 + $0xb08] sm:$0xff]  }
 0x165   : > { %7142 = vmatpush3.bf16.msra.mxu1 %v7786_v15  ;;  %7121 = vmatprep.subr.bf16.mxu0 %v7787_v16  ;;  %v7830_v15 = vld [vmem:[%s8070_s8 + $0xb88] sm:$0xff]  }
 0x166   : > { %7143 = vmatprep.subr.bf16.mxu1 %v7788_v17  ;;  %v7831_v17 = vld [vmem:[%s8070_s8 + $0xb40] sm:$0xff]  }
 0x168   : > { %7122 = vmatpush3.bf16.msra.mxu0 %v7789_v18 }
 0x169   : > { %7144 = vmatpush3.bf16.msra.mxu1 %v7790_v19  ;;  %7123 = vmatprep.subr.bf16.mxu0 %v7791_v20  ;;  %v7832_v19 = vld [vmem:[%s8070_s8 + $0xbc0] sm:$0xff]  }
 0x16a   : > { %7145 = vmatprep.subr.bf16.mxu1 %v7792_v21  ;;  %v7833_v21 = vld [vmem:[%s8070_s8 + $0xb00] sm:$0xff]  }
 0x16c   : > { %7124 = vmatpush3.bf16.msra.mxu0 %v7793_v22 }
 0x16d   : > { %7146 = vmatpush3.bf16.msra.mxu1 %v7794_v23  ;;  %7125 = vmatprep.subr.bf16.mxu0 %v7795_v24  ;;  %v7834_v24 = vld [vmem:[%s8070_s8 + $0xb80] sm:$0xff]  }
 0x16e   : > { %7147 = vmatprep.subr.bf16.mxu1 %v7796_v25  ;;  %v315_v25 = vld [vmem:[%s8065_s28 + $0x168] sm:$0xff] }
 0x170   : > { %7126 = vmatpush3.bf16.msra.mxu0 %v7797_v26 }
 0x171   : > { %7148 = vmatpush3.bf16.msra.mxu1 %v7798_v27  ;;  %7127 = vmatprep.subr.bf16.mxu0 %v7799_v29  ;;  %v317_v29 = vld [vmem:[%s8065_s28 + $0x178] sm:$0xff] }
 0x172   : > { %7149 = vmatprep.subr.bf16.mxu1 %v7800_v31  ;;  %v316_v31 = vld [vmem:[%s8065_s28 + $0x170] sm:$0xff] }
 0x174   : > { %7128 = vmatpush3.bf16.msra.mxu0 %v7801_v33 }
 0x175   : > { %7150 = vmatpush3.bf16.msra.mxu1 %v7802_v36  ;;  %7157 = vmatprep.subr.bf16.mxu0 %v7803_v49  ;;  %v380_v36 = vpack.c.bf16 %v316_v31, %v316_v31  ;;  %v7844_v49 = vld [vmem:[%s8070_s8 + $0xce8] sm:$0xff]   ;;  %v7870_v31 = vld [vmem:[%s8070_s8 + $0xdb8] sm:$0xff]  }
 0x176   : > { %7179 = vmatprep.subr.bf16.mxu1 %v7804_v51  ;;  %v7846_v51 = vld [vmem:[%s8070_s8 + $0xca8] sm:$0xff]  }
 0x177   : > { %v6865_v28 = vpop.f32.mrf.mxu0  ;;  %5327 = vmatmul.mubr.bf16.vlgmr.msra.gmra.mxu0 %v374_v47  ;;  %v7842_v47 = vld [vmem:[%s8070_s8 + $0xcb0] sm:$0xff]  }
 0x178   : > { %v6887_v30 = vpop.f32.mrf.mxu1  ;;  %5367 = vmatmul.mubr.bf16.vlgmr.msra.gmra.mxu1 %v376_v48  ;;  %7158 = vmatpush3.bf16.msra.mxu0 %v7805_v54  ;;  %v7843_v48 = vld [vmem:[%s8070_s8 + $0xc68] sm:$0xff]   ;;  %v7849_v54 = vld [vmem:[%s8070_s8 + $0xc20] sm:$0xff]  }
 0x179   : > { %v6866_v32 = vpop.f32.mrf.mxu0  ;;  %7180 = vmatpush3.bf16.msra.mxu1 %v7806_v55  ;;  %7159 = vmatprep.subr.bf16.mxu0 %v7807_v56  ;;  %v7850_v55 = vld [vmem:[%s8070_s8 + $0xca0] sm:$0xff]   ;;  %v7851_v56 = vld [vmem:[%s8070_s8 + $0xc58] sm:$0xff]  }
 0x17a   : > { %v6867_v34 = vadd.f32 %v6866_v32, %v6865_v28  ;;  %v6888_v35 = vpop.f32.mrf.mxu1  ;;  %7181 = vmatprep.subr.bf16.mxu1 %v7808_v57  ;;  %v379_v28 = vpack.c.bf16 %v315_v25, %v315_v25  ;;  %v7852_v57 = vld [vmem:[%s8070_s8 + $0xcd8] sm:$0xff]  }
 0x17b   : > { %v6889_v39 = vadd.f32 %v6888_v35, %v6887_v30  ;;  %v6868_v40 = vpop.f32.mrf.mxu0  ;;  %v314_v30 = vld [vmem:[%s8065_s28 + $0x160] sm:$0xff]  ;;  %v7867_v25 = vld [vmem:[%s8070_s8 + $0xd78] sm:$0xff]  }
 0x17c   : > { %v4849_v45 = vadd.f32 %v6867_v34, %v8444_v1  ;;  %v6890_v46 = vpop.f32.mrf.mxu1  ;;  %7160 = vmatpush3.bf16.msra.mxu0 %v7809_v58  ;;  %v7816_v1 = vld [vmem:[%s8070_s8 + $0xbe0] sm:$0xff]   ;;  %v381_v34 = vpack.c.bf16 %v317_v29, %v317_v29  ;;  %v378_v35 = vpack.c.bf16 %v314_v30, %v314_v30  ;;  %5406 = vmatprep.mubr.bf16.mxu0 %v379_v28  ;;  %v7853_v58 = vld [vmem:[%s8070_s8 + $0xc18] sm:$0xff]  }
 0x17d   : > { %v6869_v50 = vpop.f32.mrf.mxu0  ;;  %7182 = vmatpush3.bf16.msra.mxu1 %v7810_v59  ;;  %7161 = vmatprep.subr.bf16.mxu0 %v7811_v60  ;;  %v7841_v46 = vld [vmem:[%s8070_s8 + $0xc30] sm:$0xff]   ;;  %v7854_v59 = vld [vmem:[%s8070_s8 + $0xc98] sm:$0xff]  }
 0x17e   : > { %v8483_v52 = vadd.f32 %v6889_v39, %v4849_v45  ;;  %v6891_v53 = vpop.f32.mrf.mxu1  ;;  %7183 = vmatprep.subr.bf16.mxu1 %v7812_v61  ;;  %v7836_v39 = vld [vmem:[%s8070_s8 + $0xcf8] sm:$0xff]   ;;  %5446 = vmatprep.mubr.bf16.mxu1 %v381_v34  ;;  %v7840_v45 = vld [vmem:[%s8070_s8 + $0xcf0] sm:$0xff]   ;;  %v7845_v50 = vld [vmem:[%s8070_s8 + $0xc28] sm:$0xff]  }
 0x17f   : > { %v7848_v53 = vld [vmem:[%s8070_s8 + $0xce0] sm:$0xff]   ;;  %v7855_v60 = vld [vmem:[%s8070_s8 + $0xc50] sm:$0xff]   ;;  %v7868_v28 = vld [vmem:[%s8070_s8 + $0xdf8] sm:$0xff]  }
 0x180   : > { %7162 = vmatpush3.bf16.msra.mxu0 %v7813_v62  ;;  %v7856_v61 = vld [vmem:[%s8070_s8 + $0xcd0] sm:$0xff]   ;;  %v7869_v30 = vld [vmem:[%s8070_s8 + $0xd38] sm:$0xff]  }
 0x181   : > { %7184 = vmatpush3.bf16.msra.mxu1 %v7814_v63  ;;  %7163 = vmatprep.subr.bf16.mxu0 %v7815_v0  ;;  %v7857_v62 = vld [vmem:[%s8070_s8 + $0xc10] sm:$0xff]   ;;  %v7859_v0 = vld [vmem:[%s8070_s8 + $0xc48] sm:$0xff]  }
 0x182   : > { %7185 = vmatprep.subr.bf16.mxu1 %v7816_v1  ;;  %v7858_v63 = vld [vmem:[%s8070_s8 + $0xc90] sm:$0xff]   ;;  %v7860_v1 = vld [vmem:[%s8070_s8 + $0xcc8] sm:$0xff]  }
 0x183   : > { %v7873_v34 = vld [vmem:[%s8070_s8 + $0xd30] sm:$0xff]  }
 0x184   : > { %7164 = vmatpush3.bf16.msra.mxu0 %v7817_v2  ;;  %v7861_v2 = vld [vmem:[%s8070_s8 + $0xc08] sm:$0xff]  }
 0x185   : > { %7186 = vmatpush3.bf16.msra.mxu1 %v7818_v3  ;;  %7165 = vmatprep.subr.bf16.mxu0 %v7819_v4  ;;  %v7862_v3 = vld [vmem:[%s8070_s8 + $0xc88] sm:$0xff]   ;;  %v7863_v4 = vld [vmem:[%s8070_s8 + $0xc40] sm:$0xff]  }
 0x186   : > { %7187 = vmatprep.subr.bf16.mxu1 %v7820_v5 }
 0x188   : > { %7166 = vmatpush3.bf16.msra.mxu0 %v7821_v6 }
 0x189   : > { %7188 = vmatpush3.bf16.msra.mxu1 %v7822_v7  ;;  %7167 = vmatprep.subr.bf16.mxu0 %v7823_v8  ;;  %v7864_v7 = vld [vmem:[%s8070_s8 + $0xcc0] sm:$0xff]  }
 0x18a   : > { %7189 = vmatprep.subr.bf16.mxu1 %v7824_v9  ;;  %v7865_v8 = vld [vmem:[%s8070_s8 + $0xc00] sm:$0xff]  }
 0x18c   : > { %7168 = vmatpush3.bf16.msra.mxu0 %v7825_v10 }
 0x18d   : > { %7190 = vmatpush3.bf16.msra.mxu1 %v7826_v11  ;;  %7169 = vmatprep.subr.bf16.mxu0 %v7827_v12  ;;  %v7866_v11 = vld [vmem:[%s8070_s8 + $0xc80] sm:$0xff]  }
 0x18e   : > { %7191 = vmatprep.subr.bf16.mxu1 %v7828_v13 }
 0x190   : > { %7170 = vmatpush3.bf16.msra.mxu0 %v7829_v14  ;;  %v319_v14 = vld [vmem:[%s8065_s28 + $0x188] sm:$0xff] }
 0x191   : > { %7192 = vmatpush3.bf16.msra.mxu1 %v7830_v15  ;;  %7171 = vmatprep.subr.bf16.mxu0 %v7831_v17  ;;  %v321_v15 = vld [vmem:[%s8065_s28 + $0x198] sm:$0xff] }
 0x192   : > { %7193 = vmatprep.subr.bf16.mxu1 %v7832_v19  ;;  %v383_v19 = vpack.c.bf16 %v319_v14, %v319_v14 }
 0x194   : > { %7172 = vmatpush3.bf16.msra.mxu0 %v7833_v21 }
 0x195   : > { %7194 = vmatpush3.bf16.msra.mxu1 %v7834_v24  ;;  %7201 = vmatprep.subr.bf16.mxu0 %v7835_v37  ;;  %v7876_v37 = vld [vmem:[%s8070_s8 + $0xde8] sm:$0xff]  }
 0x196   : > { %7223 = vmatprep.subr.bf16.mxu1 %v7836_v39  ;;  %v7878_v39 = vld [vmem:[%s8070_s8 + $0xda8] sm:$0xff]  }
 0x197   : > { %v6909_v16 = vpop.f32.mrf.mxu0  ;;  %5407 = vmatmul.mubr.bf16.vlgmr.msra.gmra.mxu0 %v378_v35  ;;  %v7874_v35 = vld [vmem:[%s8070_s8 + $0xdb0] sm:$0xff]  }
 0x198   : > { %v6931_v18 = vpop.f32.mrf.mxu1  ;;  %5447 = vmatmul.mubr.bf16.vlgmr.msra.gmra.mxu1 %v380_v36  ;;  %7202 = vmatpush3.bf16.msra.mxu0 %v7837_v42  ;;  %v7875_v36 = vld [vmem:[%s8070_s8 + $0xd68] sm:$0xff]   ;;  %v7881_v42 = vld [vmem:[%s8070_s8 + $0xd20] sm:$0xff]  }
 0x199   : > { %v6910_v20 = vpop.f32.mrf.mxu0  ;;  %7224 = vmatpush3.bf16.msra.mxu1 %v7838_v43  ;;  %7203 = vmatprep.subr.bf16.mxu0 %v7839_v44  ;;  %v7882_v43 = vld [vmem:[%s8070_s8 + $0xda0] sm:$0xff]   ;;  %v7883_v44 = vld [vmem:[%s8070_s8 + $0xd58] sm:$0xff]  }
 0x19a   : > { %v6911_v22 = vadd.f32 %v6910_v20, %v6909_v16  ;;  %v6932_v23 = vpop.f32.mrf.mxu1  ;;  %7225 = vmatprep.subr.bf16.mxu1 %v7840_v45  ;;  %v318_v16 = vld [vmem:[%s8065_s28 + $0x180] sm:$0xff]  ;;  %v385_v20 = vpack.c.bf16 %v321_v15, %v321_v15  ;;  %5486 = vmatprep.mubr.bf16.mxu0 %v383_v19  ;;  %v7884_v45 = vld [vmem:[%s8070_s8 + $0xdd8] sm:$0xff]  }
 0x19b   : > { %v6933_v26 = vadd.f32 %v6932_v23, %v6931_v18  ;;  %v6912_v27 = vpop.f32.mrf.mxu0  ;;  %v382_v21 = vpack.c.bf16 %v318_v16, %v318_v16  ;;  %v7900_v15 = vld [vmem:[%s8070_s8 + $0xef8] sm:$0xff]  }
 0x19c   : > { %v4929_v32 = vadd.f32 %v6911_v22, %v8483_v52  ;;  %v6934_v33 = vpop.f32.mrf.mxu1  ;;  %7204 = vmatpush3.bf16.msra.mxu0 %v7841_v46  ;;  %v7847_v52 = vld [vmem:[%s8070_s8 + $0xc60] sm:$0xff]   ;;  %v320_v22 = vld [vmem:[%s8065_s28 + $0x190] sm:$0xff]  ;;  %5526 = vmatprep.mubr.bf16.mxu1 %v385_v20  ;;  %v7885_v46 = vld [vmem:[%s8070_s8 + $0xd18] sm:$0xff]  }
 0x19d   : > { %v6913_v38 = vpop.f32.mrf.mxu0  ;;  %7226 = vmatpush3.bf16.msra.mxu1 %v7842_v47  ;;  %7205 = vmatprep.subr.bf16.mxu0 %v7843_v48  ;;  %v384_v24 = vpack.c.bf16 %v320_v22, %v320_v22  ;;  %v7872_v33 = vld [vmem:[%s8070_s8 + $0xdf0] sm:$0xff]   ;;  %v7886_v47 = vld [vmem:[%s8070_s8 + $0xd98] sm:$0xff]  }
 0x19e   : > { %v8522_v40 = vadd.f32 %v6933_v26, %v4929_v32  ;;  %v6935_v41 = vpop.f32.mrf.mxu1  ;;  %7227 = vmatprep.subr.bf16.mxu1 %v7844_v49  ;;  %v7871_v32 = vld [vmem:[%s8070_s8 + $0xd70] sm:$0xff]   ;;  %v7877_v38 = vld [vmem:[%s8070_s8 + $0xd28] sm:$0xff]   ;;  %v7902_v19 = vld [vmem:[%s8070_s8 + $0xeb8] sm:$0xff]  }
 0x19f   : > { %v7880_v41 = vld [vmem:[%s8070_s8 + $0xde0] sm:$0xff]   ;;  %v7887_v48 = vld [vmem:[%s8070_s8 + $0xd50] sm:$0xff]  }
 0x1a0   : > { %7206 = vmatpush3.bf16.msra.mxu0 %v7845_v50  ;;  %v7888_v49 = vld [vmem:[%s8070_s8 + $0xdd0] sm:$0xff]  }
 0x1a1   : > { %7228 = vmatpush3.bf16.msra.mxu1 %v7846_v51  ;;  %7207 = vmatprep.subr.bf16.mxu0 %v7847_v52  ;;  %v7889_v50 = vld [vmem:[%s8070_s8 + $0xd10] sm:$0xff]   ;;  %v7891_v52 = vld [vmem:[%s8070_s8 + $0xd48] sm:$0xff]  }
 0x1a2   : > { %7229 = vmatprep.subr.bf16.mxu1 %v7848_v53  ;;  %v7890_v51 = vld [vmem:[%s8070_s8 + $0xd90] sm:$0xff]   ;;  %v7892_v53 = vld [vmem:[%s8070_s8 + $0xdc8] sm:$0xff]  }
 0x1a3   : > { %v7903_v20 = vld [vmem:[%s8070_s8 + $0xe70] sm:$0xff]  }
 0x1a4   : > { %7208 = vmatpush3.bf16.msra.mxu0 %v7849_v54  ;;  %v7893_v54 = vld [vmem:[%s8070_s8 + $0xd08] sm:$0xff]   ;;  %v7905_v22 = vld [vmem:[%s8070_s8 + $0xe30] sm:$0xff]  }
 0x1a5   : > { %7230 = vmatpush3.bf16.msra.mxu1 %v7850_v55  ;;  %7209 = vmatprep.subr.bf16.mxu0 %v7851_v56  ;;  %v7894_v55 = vld [vmem:[%s8070_s8 + $0xd88] sm:$0xff]  }
 0x1a6   : > { %7231 = vmatprep.subr.bf16.mxu1 %v7852_v57  ;;  %v7895_v57 = vld [vmem:[%s8070_s8 + $0xd40] sm:$0xff]  }
 0x1a8   : > { %7210 = vmatpush3.bf16.msra.mxu0 %v7853_v58 }
 0x1a9   : > { %7232 = vmatpush3.bf16.msra.mxu1 %v7854_v59  ;;  %7211 = vmatprep.subr.bf16.mxu0 %v7855_v60  ;;  %v7896_v59 = vld [vmem:[%s8070_s8 + $0xdc0] sm:$0xff]  }
 0x1aa   : > { %7233 = vmatprep.subr.bf16.mxu1 %v7856_v61  ;;  %v7897_v61 = vld [vmem:[%s8070_s8 + $0xd00] sm:$0xff]  }
 0x1ac   : > { %7212 = vmatpush3.bf16.msra.mxu0 %v7857_v62 }
 0x1ad   : > { %7234 = vmatpush3.bf16.msra.mxu1 %v7858_v63  ;;  %7213 = vmatprep.subr.bf16.mxu0 %v7859_v0  ;;  %v7898_v0 = vld [vmem:[%s8070_s8 + $0xd80] sm:$0xff]  }
 0x1ae   : > { %7235 = vmatprep.subr.bf16.mxu1 %v7860_v1  ;;  %v323_v1 = vld [vmem:[%s8065_s28 + $0x1a8] sm:$0xff] }
 0x1b0   : > { %7214 = vmatpush3.bf16.msra.mxu0 %v7861_v2  ;;  %v325_v2 = vld [vmem:[%s8065_s28 + $0x1b8] sm:$0xff] }
 0x1b1   : > { %7236 = vmatpush3.bf16.msra.mxu1 %v7862_v3  ;;  %7215 = vmatprep.subr.bf16.mxu0 %v7863_v4 }
 0x1b2   : > { %7237 = vmatprep.subr.bf16.mxu1 %v7864_v7  ;;  %v322_v7 = vld [vmem:[%s8065_s28 + $0x1a0] sm:$0xff] }
 0x1b4   : > { %7216 = vmatpush3.bf16.msra.mxu0 %v7865_v8  ;;  %v324_v8 = vld [vmem:[%s8065_s28 + $0x1b0] sm:$0xff] }
 0x1b5   : > { %7238 = vmatpush3.bf16.msra.mxu1 %v7866_v11  ;;  %7245 = vmatprep.subr.bf16.mxu0 %v7867_v25  ;;  %v386_v11 = vpack.c.bf16 %v322_v7, %v322_v7  ;;  %v7908_v25 = vld [vmem:[%s8070_s8 + $0xee8] sm:$0xff]   ;;  %v7934_v7 = vld [vmem:[%s8070_s8 + $0xfb8] sm:$0xff]  }
 0x1b6   : > { %7267 = vmatprep.subr.bf16.mxu1 %v7868_v28  ;;  %v7911_v28 = vld [vmem:[%s8070_s8 + $0xe60] sm:$0xff]  }
 0x1b7   : > { %v6953_v5 = vpop.f32.mrf.mxu0  ;;  %5487 = vmatmul.mubr.bf16.vlgmr.msra.gmra.mxu0 %v382_v21  ;;  %v7904_v21 = vld [vmem:[%s8070_s8 + $0xef0] sm:$0xff]  }
 0x1b8   : > { %v6975_v6 = vpop.f32.mrf.mxu1  ;;  %5527 = vmatmul.mubr.bf16.vlgmr.msra.gmra.mxu1 %v384_v24  ;;  %7246 = vmatpush3.bf16.msra.mxu0 %v7869_v30  ;;  %v7907_v24 = vld [vmem:[%s8070_s8 + $0xe68] sm:$0xff]   ;;  %v7913_v30 = vld [vmem:[%s8070_s8 + $0xe20] sm:$0xff]  }
 0x1b9   : > { %v6954_v9 = vpop.f32.mrf.mxu0  ;;  %7268 = vmatpush3.bf16.msra.mxu1 %v7870_v31  ;;  %7247 = vmatprep.subr.bf16.mxu0 %v7871_v32  ;;  %v7914_v31 = vld [vmem:[%s8070_s8 + $0xea0] sm:$0xff]   ;;  %v7915_v32 = vld [vmem:[%s8070_s8 + $0xe58] sm:$0xff]  }
 0x1ba   : > { %v6976_v10 = vpop.f32.mrf.mxu1  ;;  %v6955_v12 = vadd.f32 %v6954_v9, %v6953_v5  ;;  %7269 = vmatprep.subr.bf16.mxu1 %v7872_v33  ;;  %v387_v5 = vpack.c.bf16 %v323_v1, %v323_v1  ;;  %v7916_v33 = vld [vmem:[%s8070_s8 + $0xed8] sm:$0xff]  }
 0x1bb   : > { %v6977_v13 = vadd.f32 %v6976_v10, %v6975_v6  ;;  %v6956_v17 = vpop.f32.mrf.mxu0  ;;  %v389_v6 = vpack.c.bf16 %v325_v2, %v325_v2  ;;  %v7931_v1 = vld [vmem:[%s8070_s8 + $0xf78] sm:$0xff]  }
 0x1bc   : > { %v6978_v18 = vpop.f32.mrf.mxu1  ;;  %v5009_v23 = vadd.f32 %v6955_v12, %v8522_v40  ;;  %7248 = vmatpush3.bf16.msra.mxu0 %v7873_v34  ;;  %v7879_v40 = vld [vmem:[%s8070_s8 + $0xd60] sm:$0xff]   ;;  %v388_v12 = vpack.c.bf16 %v324_v8, %v324_v8  ;;  %5566 = vmatprep.mubr.bf16.mxu0 %v387_v5  ;;  %v7917_v34 = vld [vmem:[%s8070_s8 + $0xe18] sm:$0xff]   ;;  %v7935_v8 = vld [vmem:[%s8070_s8 + $0xf70] sm:$0xff]  }
 0x1bd   : > { %v6957_v26 = vpop.f32.mrf.mxu0  ;;  %7270 = vmatpush3.bf16.msra.mxu1 %v7874_v35  ;;  %7249 = vmatprep.subr.bf16.mxu0 %v7875_v36  ;;  %v7901_v18 = vld [vmem:[%s8070_s8 + $0xe38] sm:$0xff]   ;;  %v7919_v36 = vld [vmem:[%s8070_s8 + $0xe50] sm:$0xff]  }
 0x1be   : > { %v6979_v27 = vpop.f32.mrf.mxu1  ;;  %v8561_v29 = vadd.f32 %v6977_v13, %v5009_v23  ;;  %7271 = vmatprep.subr.bf16.mxu1 %v7876_v37  ;;  %v7899_v13 = vld [vmem:[%s8070_s8 + $0xe78] sm:$0xff]   ;;  %5606 = vmatprep.mubr.bf16.mxu1 %v389_v6  ;;  %v7906_v23 = vld [vmem:[%s8070_s8 + $0xeb0] sm:$0xff]   ;;  %v7909_v26 = vld [vmem:[%s8070_s8 + $0xe28] sm:$0xff]  }
 0x1bf   : > { %v7910_v27 = vld [vmem:[%s8070_s8 + $0xea8] sm:$0xff]   ;;  %v7918_v35 = vld [vmem:[%s8070_s8 + $0xe98] sm:$0xff]   ;;  %v7920_v37 = vld [vmem:[%s8070_s8 + $0xed0] sm:$0xff]  }
 0x1c0   : > { %7250 = vmatpush3.bf16.msra.mxu0 %v7877_v38  ;;  %v7921_v38 = vld [vmem:[%s8070_s8 + $0xe10] sm:$0xff]   ;;  %v7933_v6 = vld [vmem:[%s8070_s8 + $0xf38] sm:$0xff]  }
 0x1c1   : > { %7272 = vmatpush3.bf16.msra.mxu1 %v7878_v39  ;;  %7251 = vmatprep.subr.bf16.mxu0 %v7879_v40  ;;  %v7922_v39 = vld [vmem:[%s8070_s8 + $0xe90] sm:$0xff]   ;;  %v7923_v40 = vld [vmem:[%s8070_s8 + $0xe48] sm:$0xff]  }
 0x1c2   : > { %7273 = vmatprep.subr.bf16.mxu1 %v7880_v41  ;;  %v7924_v41 = vld [vmem:[%s8070_s8 + $0xec8] sm:$0xff]  }
 0x1c4   : > { %7252 = vmatpush3.bf16.msra.mxu0 %v7881_v42  ;;  %v7925_v42 = vld [vmem:[%s8070_s8 + $0xe08] sm:$0xff]  }
 0x1c5   : > { %7274 = vmatpush3.bf16.msra.mxu1 %v7882_v43  ;;  %7253 = vmatprep.subr.bf16.mxu0 %v7883_v44  ;;  %v7926_v43 = vld [vmem:[%s8070_s8 + $0xe88] sm:$0xff]  }
 0x1c6   : > { %7275 = vmatprep.subr.bf16.mxu1 %v7884_v45  ;;  %v7927_v45 = vld [vmem:[%s8070_s8 + $0xe40] sm:$0xff]  }
 0x1c8   : > { %7254 = vmatpush3.bf16.msra.mxu0 %v7885_v46 }
 0x1c9   : > { %7276 = vmatpush3.bf16.msra.mxu1 %v7886_v47  ;;  %7255 = vmatprep.subr.bf16.mxu0 %v7887_v48  ;;  %v7928_v47 = vld [vmem:[%s8070_s8 + $0xec0] sm:$0xff]  }
 0x1ca   : > { %7277 = vmatprep.subr.bf16.mxu1 %v7888_v49  ;;  %v7929_v49 = vld [vmem:[%s8070_s8 + $0xe00] sm:$0xff]  }
 0x1cc   : > { %7256 = vmatpush3.bf16.msra.mxu0 %v7889_v50 }
 0x1cd   : > { %7278 = vmatpush3.bf16.msra.mxu1 %v7890_v51  ;;  %7257 = vmatprep.subr.bf16.mxu0 %v7891_v52  ;;  %v7930_v52 = vld [vmem:[%s8070_s8 + $0xe80] sm:$0xff]  }
 0x1ce   : > { %7279 = vmatprep.subr.bf16.mxu1 %v7892_v53  ;;  %v327_v53 = vld [vmem:[%s8065_s28 + $0x1c8] sm:$0xff] }
 0x1d0   : > { %7258 = vmatpush3.bf16.msra.mxu0 %v7893_v54 }
 0x1d1   : > { %7280 = vmatpush3.bf16.msra.mxu1 %v7894_v55  ;;  %7259 = vmatprep.subr.bf16.mxu0 %v7895_v57  ;;  %v329_v57 = vld [vmem:[%s8065_s28 + $0x1d8] sm:$0xff] }
 0x1d2   : > { %7281 = vmatprep.subr.bf16.mxu1 %v7896_v59  ;;  %v328_v59 = vld [vmem:[%s8065_s28 + $0x1d0] sm:$0xff] }
 0x1d4   : > { %7260 = vmatpush3.bf16.msra.mxu0 %v7897_v61 }
 0x1d5   : > { %7282 = vmatpush3.bf16.msra.mxu1 %v7898_v0  ;;  %7289 = vmatprep.subr.bf16.mxu0 %v7899_v13  ;;  %v392_v0 = vpack.c.bf16 %v328_v59, %v328_v59  ;;  %v7940_v13 = vld [vmem:[%s8070_s8 + $0xfe8] sm:$0xff]  }
 0x1d6   : > { %7311 = vmatprep.subr.bf16.mxu1 %v7900_v15  ;;  %v7942_v15 = vld [vmem:[%s8070_s8 + $0xfa8] sm:$0xff]  }
 0x1d7   : > { %v6997_v56 = vpop.f32.mrf.mxu0  ;;  %5567 = vmatmul.mubr.bf16.vlgmr.msra.gmra.mxu0 %v386_v11  ;;  %v7938_v11 = vld [vmem:[%s8070_s8 + $0xfb0] sm:$0xff]  }
 0x1d8   : > { %v7019_v58 = vpop.f32.mrf.mxu1  ;;  %5607 = vmatmul.mubr.bf16.vlgmr.msra.gmra.mxu1 %v388_v12  ;;  %7290 = vmatpush3.bf16.msra.mxu0 %v7901_v18  ;;  %v7939_v12 = vld [vmem:[%s8070_s8 + $0xf68] sm:$0xff]   ;;  %v7945_v18 = vld [vmem:[%s8070_s8 + $0xf20] sm:$0xff]  }
 0x1d9   : > { %v6998_v60 = vpop.f32.mrf.mxu0  ;;  %7312 = vmatpush3.bf16.msra.mxu1 %v7902_v19  ;;  %7291 = vmatprep.subr.bf16.mxu0 %v7903_v20  ;;  %v7946_v19 = vld [vmem:[%s8070_s8 + $0xfa0] sm:$0xff]   ;;  %v7947_v20 = vld [vmem:[%s8070_s8 + $0xf58] sm:$0xff]  }
 0x1da   : > { %v6999_v62 = vadd.f32 %v6998_v60, %v6997_v56  ;;  %v7020_v63 = vpop.f32.mrf.mxu1  ;;  %7313 = vmatprep.subr.bf16.mxu1 %v7904_v21  ;;  %v391_v56 = vpack.c.bf16 %v327_v53, %v327_v53  ;;  %v7948_v21 = vld [vmem:[%s8070_s8 + $0xfd8] sm:$0xff]  }
 0x1db   : > { %v7021_v3 = vadd.f32 %v7020_v63, %v7019_v58  ;;  %v7000_v4 = vpop.f32.mrf.mxu0  ;;  %v326_v58 = vld [vmem:[%s8065_s28 + $0x1c0] sm:$0xff] }
 0x1dc   : > { %v5089_v9 = vadd.f32 %v6999_v62, %v8561_v29  ;;  %v7022_v10 = vpop.f32.mrf.mxu1  ;;  %7292 = vmatpush3.bf16.msra.mxu0 %v7905_v22  ;;  %v7912_v29 = vld [vmem:[%s8070_s8 + $0xee0] sm:$0xff]   ;;  %v393_v62 = vpack.c.bf16 %v329_v57, %v329_v57  ;;  %v390_v63 = vpack.c.bf16 %v326_v58, %v326_v58  ;;  %5646 = vmatprep.mubr.bf16.mxu0 %v391_v56  ;;  %v7949_v22 = vld [vmem:[%s8070_s8 + $0xf18] sm:$0xff]  }
 0x1dd   : > { %v7001_v14 = vpop.f32.mrf.mxu0  ;;  %7314 = vmatpush3.bf16.msra.mxu1 %v7906_v23  ;;  %7293 = vmatprep.subr.bf16.mxu0 %v7907_v24  ;;  %v7937_v10 = vld [vmem:[%s8070_s8 + $0xf30] sm:$0xff]   ;;  %v7950_v23 = vld [vmem:[%s8070_s8 + $0xf98] sm:$0xff]  }
 0x1de   : > { %v8600_v16 = vadd.f32 %v7021_v3, %v5089_v9  ;;  %v7023_v17 = vpop.f32.mrf.mxu1  ;;  %7315 = vmatprep.subr.bf16.mxu1 %v7908_v25  ;;  %v7932_v3 = vld [vmem:[%s8070_s8 + $0xff8] sm:$0xff]   ;;  %5686 = vmatprep.mubr.bf16.mxu1 %v393_v62  ;;  %v7936_v9 = vld [vmem:[%s8070_s8 + $0xff0] sm:$0xff]   ;;  %v7941_v14 = vld [vmem:[%s8070_s8 + $0xf28] sm:$0xff]  }
 0x1df   : > { %v7944_v17 = vld [vmem:[%s8070_s8 + $0xfe0] sm:$0xff]   ;;  %v7951_v24 = vld [vmem:[%s8070_s8 + $0xf50] sm:$0xff]  }
 0x1e0   : > { %7294 = vmatpush3.bf16.msra.mxu0 %v7909_v26  ;;  %v7952_v25 = vld [vmem:[%s8070_s8 + $0xfd0] sm:$0xff]  }
 0x1e1   : > { %7316 = vmatpush3.bf16.msra.mxu1 %v7910_v27  ;;  %7295 = vmatprep.subr.bf16.mxu0 %v7911_v28  ;;  %v7953_v26 = vld [vmem:[%s8070_s8 + $0xf10] sm:$0xff]   ;;  %v7955_v28 = vld [vmem:[%s8070_s8 + $0xf48] sm:$0xff]  }
 0x1e2   : > { %7317 = vmatprep.subr.bf16.mxu1 %v7912_v29  ;;  %v7954_v27 = vld [vmem:[%s8070_s8 + $0xf90] sm:$0xff]   ;;  %v7956_v29 = vld [vmem:[%s8070_s8 + $0xfc8] sm:$0xff]  }
 0x1e4   : > { %7296 = vmatpush3.bf16.msra.mxu0 %v7913_v30  ;;  %v7957_v30 = vld [vmem:[%s8070_s8 + $0xf08] sm:$0xff]  }
 0x1e5   : > { %7318 = vmatpush3.bf16.msra.mxu1 %v7914_v31  ;;  %7297 = vmatprep.subr.bf16.mxu0 %v7915_v32  ;;  %v7958_v31 = vld [vmem:[%s8070_s8 + $0xf88] sm:$0xff]   ;;  %v7959_v32 = vld [vmem:[%s8070_s8 + $0xf40] sm:$0xff]  }
 0x1e6   : > { %7319 = vmatprep.subr.bf16.mxu1 %v7916_v33 }
 0x1e8   : > { %7298 = vmatpush3.bf16.msra.mxu0 %v7917_v34 }
 0x1e9   : > { %7320 = vmatpush3.bf16.msra.mxu1 %v7918_v35  ;;  %7299 = vmatprep.subr.bf16.mxu0 %v7919_v36  ;;  %v7960_v35 = vld [vmem:[%s8070_s8 + $0xfc0] sm:$0xff]  }
 0x1ea   : > { %7321 = vmatprep.subr.bf16.mxu1 %v7920_v37  ;;  %v7961_v36 = vld [vmem:[%s8070_s8 + $0xf00] sm:$0xff]  }
 0x1ec   : > { %7300 = vmatpush3.bf16.msra.mxu0 %v7921_v38 }
 0x1ed   : > { %7322 = vmatpush3.bf16.msra.mxu1 %v7922_v39  ;;  %7301 = vmatprep.subr.bf16.mxu0 %v7923_v40  ;;  %v7962_v39 = vld [vmem:[%s8070_s8 + $0xf80] sm:$0xff]  }
 0x1ee   : > { %7323 = vmatprep.subr.bf16.mxu1 %v7924_v41 }
 0x1f0   : > { %7302 = vmatpush3.bf16.msra.mxu0 %v7925_v42  ;;  %v331_v42 = vld [vmem:[%s8065_s28 + $0x1e8] sm:$0xff] }
 0x1f1   : > { %7324 = vmatpush3.bf16.msra.mxu1 %v7926_v43  ;;  %7303 = vmatprep.subr.bf16.mxu0 %v7927_v45  ;;  %v333_v43 = vld [vmem:[%s8065_s28 + $0x1f8] sm:$0xff] }
 0x1f2   : > { %7325 = vmatprep.subr.bf16.mxu1 %v7928_v47  ;;  %v395_v47 = vpack.c.bf16 %v331_v42, %v331_v42 }
 0x1f4   : > { %7304 = vmatpush3.bf16.msra.mxu0 %v7929_v49 }
 0x1f5   : > { %7326 = vmatpush3.bf16.msra.mxu1 %v7930_v52  ;;  %7333 = vmatprep.subr.bf16.mxu0 %v7931_v1 }
 0x1f6   : > { %7355 = vmatprep.subr.bf16.mxu1 %v7932_v3 }
 0x1f7   : > { %v7041_v44 = vpop.f32.mrf.mxu0  ;;  %5647 = vmatmul.mubr.bf16.vlgmr.msra.gmra.mxu0 %v390_v63 }
 0x1f8   : > { %v7063_v46 = vpop.f32.mrf.mxu1  ;;  %5687 = vmatmul.mubr.bf16.vlgmr.msra.gmra.mxu1 %v392_v0  ;;  %7334 = vmatpush3.bf16.msra.mxu0 %v7933_v6 }
 0x1f9   : > { %v7042_v48 = vpop.f32.mrf.mxu0  ;;  %7356 = vmatpush3.bf16.msra.mxu1 %v7934_v7  ;;  %7335 = vmatprep.subr.bf16.mxu0 %v7935_v8 }
 0x1fa   : > { %v7043_v50 = vadd.f32 %v7042_v48, %v7041_v44  ;;  %v7064_v51 = vpop.f32.mrf.mxu1  ;;  %7357 = vmatprep.subr.bf16.mxu1 %v7936_v9  ;;  %v330_v44 = vld [vmem:[%s8065_s28 + $0x1e0] sm:$0xff]  ;;  %v397_v48 = vpack.c.bf16 %v333_v43, %v333_v43  ;;  %5726 = vmatprep.mubr.bf16.mxu0 %v395_v47 }
 0x1fb   : > { %v7065_v54 = vadd.f32 %v7064_v51, %v7063_v46  ;;  %v7044_v55 = vpop.f32.mrf.mxu0  ;;  %v394_v49 = vpack.c.bf16 %v330_v44, %v330_v44 }
 0x1fc   : > { %v5169_v60 = vadd.f32 %v7043_v50, %v8600_v16  ;;  %v7066_v61 = vpop.f32.mrf.mxu1  ;;  %7336 = vmatpush3.bf16.msra.mxu0 %v7937_v10  ;;  %v7943_v16 = vld [vmem:[%s8070_s8 + $0xf60] sm:$0xff]   ;;  %v332_v50 = vld [vmem:[%s8065_s28 + $0x1f0] sm:$0xff]  ;;  %5766 = vmatprep.mubr.bf16.mxu1 %v397_v48 }
 0x1fd   : > { %v7045_v2 = vpop.f32.mrf.mxu0  ;;  %7358 = vmatpush3.bf16.msra.mxu1 %v7938_v11  ;;  %7337 = vmatprep.subr.bf16.mxu0 %v7939_v12  ;;  %v396_v52 = vpack.c.bf16 %v332_v50, %v332_v50 }
 0x1fe   : > { %v8639_v4 = vadd.f32 %v7065_v54, %v5169_v60  ;;  %v7067_v5 = vpop.f32.mrf.mxu1  ;;  %7359 = vmatprep.subr.bf16.mxu1 %v7940_v13 }
 0x200   : > { %7338 = vmatpush3.bf16.msra.mxu0 %v7941_v14 }
 0x201   : > { %7360 = vmatpush3.bf16.msra.mxu1 %v7942_v15  ;;  %7339 = vmatprep.subr.bf16.mxu0 %v7943_v16 }
 0x202   : > { %7361 = vmatprep.subr.bf16.mxu1 %v7944_v17 }
 0x204   : > { %7340 = vmatpush3.bf16.msra.mxu0 %v7945_v18 }
 0x205   : > { %7362 = vmatpush3.bf16.msra.mxu1 %v7946_v19  ;;  %7341 = vmatprep.subr.bf16.mxu0 %v7947_v20 }
 0x206   : > { %7363 = vmatprep.subr.bf16.mxu1 %v7948_v21 }
 0x208   : > { %7342 = vmatpush3.bf16.msra.mxu0 %v7949_v22 }
 0x209   : > { %7364 = vmatpush3.bf16.msra.mxu1 %v7950_v23  ;;  %7343 = vmatprep.subr.bf16.mxu0 %v7951_v24 }
 0x20a   : > { %7365 = vmatprep.subr.bf16.mxu1 %v7952_v25 }
 0x20c   : > { %7344 = vmatpush3.bf16.msra.mxu0 %v7953_v26 }
 0x20d   : > { %7366 = vmatpush3.bf16.msra.mxu1 %v7954_v27  ;;  %7345 = vmatprep.subr.bf16.mxu0 %v7955_v28 }
 0x20e   : > { %7367 = vmatprep.subr.bf16.mxu1 %v7956_v29 }
 0x210   : > { %7346 = vmatpush3.bf16.msra.mxu0 %v7957_v30 }
 0x211   : > { %7368 = vmatpush3.bf16.msra.mxu1 %v7958_v31  ;;  %7347 = vmatprep.subr.bf16.mxu0 %v7959_v32 }
 0x212   : > { %7369 = vmatprep.subr.bf16.mxu1 %v7960_v35 }
 0x214   : > { %7348 = vmatpush3.bf16.msra.mxu0 %v7961_v36 }
 0x215   : > { %7370 = vmatpush3.bf16.msra.mxu1 %v7962_v39 }
 0x217   : > { %v7085_v33 = vpop.f32.mrf.mxu0  ;;  %5727 = vmatmul.mubr.bf16.vlgmr.msra.gmra.mxu0 %v394_v49 }
 0x218   : > { %v7107_v34 = vpop.f32.mrf.mxu1  ;;  %5767 = vmatmul.mubr.bf16.vlgmr.msra.gmra.mxu1 %v396_v52 }
 0x219   : > { %v7086_v37 = vpop.f32.mrf.mxu0 }
 0x21a   : > { %v7108_v38 = vpop.f32.mrf.mxu1  ;;  %v7087_v40 = vadd.f32 %v7086_v37, %v7085_v33 }
 0x21b   : > { %v7109_v41 = vadd.f32 %v7108_v38, %v7107_v34  ;;  %v7088_v45 = vpop.f32.mrf.mxu0 }
 0x21c   : > { %v7110_v46 = vpop.f32.mrf.mxu1  ;;  %v5249_v51 = vadd.f32 %v7087_v40, %v8639_v4 }
 0x21d   : > { %v7089_v53 = vpop.f32.mrf.mxu0 }
 0x21e   : > { %v7111_v54 = vpop.f32.mrf.mxu1  ;;  %v5289_v55 = vadd.f32 %v7109_v41, %v5249_v51 }
 0x237   : > { %v7129_v56 = vpop.f32.mrf.mxu0 }
 0x238   : > { %v7151_v57 = vpop.f32.mrf.mxu1 }
 0x239   : > { %v7130_v58 = vpop.f32.mrf.mxu0 }
 0x23a   : > { %v7131_v59 = vadd.f32 %v7130_v58, %v7129_v56  ;;  %v7152_v60 = vpop.f32.mrf.mxu1 }
 0x23b   : > { %v7153_v61 = vadd.f32 %v7152_v60, %v7151_v57  ;;  %v7132_v62 = vpop.f32.mrf.mxu0 }
 0x23c   : > { %v5329_v63 = vadd.f32 %v7131_v59, %v5289_v55  ;;  %v7154_v0 = vpop.f32.mrf.mxu1 }
 0x23d   : > { %v7133_v1 = vpop.f32.mrf.mxu0 }
 0x23e   : > { %v5369_v2 = vadd.f32 %v7153_v61, %v5329_v63  ;;  %v7155_v3 = vpop.f32.mrf.mxu1  ;;  %v269_v61 = vld [vmem:[#allocation2] sm:$0xff] }
 0x257   : > { %v7173_v4 = vpop.f32.mrf.mxu0 }
 0x258   : > { %v7195_v5 = vpop.f32.mrf.mxu1 }
 0x259   : > { %v7174_v6 = vpop.f32.mrf.mxu0 }
 0x25a   : > { %v7175_v7 = vadd.f32 %v7174_v6, %v7173_v4  ;;  %v7196_v8 = vpop.f32.mrf.mxu1 }
 0x25b   : > { %v7197_v9 = vadd.f32 %v7196_v8, %v7195_v5  ;;  %v7176_v10 = vpop.f32.mrf.mxu0 }
 0x25c   : > { %v5409_v11 = vadd.f32 %v7175_v7, %v5369_v2  ;;  %v7198_v12 = vpop.f32.mrf.mxu1 }
 0x25d   : > { %v7177_v13 = vpop.f32.mrf.mxu0 }
 0x25e   : > { %v5449_v14 = vadd.f32 %v7197_v9, %v5409_v11  ;;  %v7199_v15 = vpop.f32.mrf.mxu1 }
 0x277   : > { %v7217_v16 = vpop.f32.mrf.mxu0 }
 0x278   : > { %v7239_v17 = vpop.f32.mrf.mxu1 }
 0x279   : > { %v7218_v18 = vpop.f32.mrf.mxu0 }
 0x27a   : > { %v7240_v19 = vpop.f32.mrf.mxu1  ;;  %v7219_v20 = vadd.f32 %v7218_v18, %v7217_v16 }
 0x27b   : > { %v7241_v21 = vadd.f32 %v7240_v19, %v7239_v17  ;;  %v7220_v22 = vpop.f32.mrf.mxu0 }
 0x27c   : > { %v7242_v23 = vpop.f32.mrf.mxu1  ;;  %v5489_v24 = vadd.f32 %v7219_v20, %v5449_v14 }
 0x27d   : > { %v7221_v25 = vpop.f32.mrf.mxu0 }
 0x27e   : > { %v7243_v26 = vpop.f32.mrf.mxu1  ;;  %v5529_v27 = vadd.f32 %v7241_v21, %v5489_v24 }
 0x297   : > { %v7261_v28 = vpop.f32.mrf.mxu0 }
 0x298   : > { %v7283_v29 = vpop.f32.mrf.mxu1 }
 0x299   : > { %v7262_v30 = vpop.f32.mrf.mxu0 }
 0x29a   : > { %v7284_v31 = vpop.f32.mrf.mxu1  ;;  %v7263_v44 = vadd.f32 %v7262_v30, %v7261_v28 }
 0x29b   : > { %v7264_v32 = vpop.f32.mrf.mxu0  ;;  %v7285_v46 = vadd.f32 %v7284_v31, %v7283_v29 }
 0x29c   : > { %v7286_v33 = vpop.f32.mrf.mxu1  ;;  %v5569_v45 = vadd.f32 %v7263_v44, %v5529_v27 }
 0x29d   : > { %v7265_v34 = vpop.f32.mrf.mxu0 }
 0x29e   : > { %v7287_v35 = vpop.f32.mrf.mxu1  ;;  %v5609_v48 = vadd.f32 %v7285_v46, %v5569_v45 }
 0x2b7   : > { %v7305_v36 = vpop.f32.mrf.mxu0 }
 0x2b8   : > { %v7327_v37 = vpop.f32.mrf.mxu1 }
 0x2b9   : > { %v7306_v38 = vpop.f32.mrf.mxu0 }
 0x2ba   : > { %v7328_v39 = vpop.f32.mrf.mxu1  ;;  %v7307_v47 = vadd.f32 %v7306_v38, %v7305_v36 }
 0x2bb   : > { %v7308_v40 = vpop.f32.mrf.mxu0  ;;  %v7329_v50 = vadd.f32 %v7328_v39, %v7327_v37 }
 0x2bc   : > { %v7330_v41 = vpop.f32.mrf.mxu1  ;;  %v5649_v49 = vadd.f32 %v7307_v47, %v5609_v48 }
 0x2bd   : > { %v7309_v42 = vpop.f32.mrf.mxu0 }
 0x2be   : > { %v7331_v43 = vpop.f32.mrf.mxu1  ;;  %v5689_v55 = vadd.f32 %v7329_v50, %v5649_v49 }
 0x2d7   : > { %v7349_v51 = vpop.f32.mrf.mxu0 }
 0x2d8   : > { %v7371_v52 = vpop.f32.mrf.mxu1 }
 0x2d9   : > { %v7350_v53 = vpop.f32.mrf.mxu0 }
 0x2da   : > { %v7372_v54 = vpop.f32.mrf.mxu1  ;;  %v7351_v56 = vadd.f32 %v7350_v53, %v7349_v51 }
 0x2db   : > { %v7352_v57 = vpop.f32.mrf.mxu0  ;;  %v7373_v60 = vadd.f32 %v7372_v54, %v7371_v52 }
 0x2dc   : > { %v7374_v58 = vpop.f32.mrf.mxu1  ;;  %v5729_v59 = vadd.f32 %v7351_v56, %v5689_v55 }
 0x2dd   : > { %v7353_v62 = vpop.f32.mrf.mxu0 }
 0x2de   : > { %v7375_v63 = vpop.f32.mrf.mxu1  ;;  %v5769_v0 = vadd.f32 %v7373_v60, %v5729_v59  ;;  %5780 = sbr.rel (%p6652_p6) target bundleno = 1164 (0x48c), region = 52 }
 0x2e0   : > { %v5774_v1 = vadd.f32 %v5769_v0, %v269_v61 }
 0x2e2   : > { %5776 = vst.msk [vmem:[#allocation2] sm:$0xff] %vm5775_vm1, %v5774_v1 }
 0x2e3   : > { %v7963_v2 = vld [vmem:[%s8753_s4 + $0x18] sm:$0xff]   ;;  %v8012_v3 = vmov 0.0   ;;  %v7964_v4 = vld [vmem:[%s8753_s4 + $0x10] sm:$0xff]   ;;  %vm8013_vm2 = vmmov 0   ;;  %v5797_v5 = vld [vmem:[%s8750_s1] sm:$0xff]  ;;  %v5967_v23 = vlaneseq  ;;  %vm6028_vm3 = vcmask 785408  }
 0x2e4   : > { %7393 = vmatprep.subr.bf16.mxu0 %v8012_v3  ;;  %7417 = vmatprep.subr.bf16.mxu1 %v8012_v3  ;;  %v5798_v6 = vpack.c.bf16 %v5797_v5, %v5797_v5  ;;  %v7965_v7 = vld [vmem:[%s8753_s4 + $0x8] sm:$0xff]   ;;  %v7966_v8 = vld [vmem:[%s8753_s4] sm:$0xff]   ;;  %v7971_v17 = vld [vmem:[%s8754_s5 + $0x18] sm:$0xff]  }
 0x2e5   : > { %7394 = vmatpush3.bf16.msra.mxu0 %v7963_v2  ;;  %7397 = vmatprep.mubr.msk.bf16.mxu0 %vm8013_vm2, %v8012_v3  ;;  %v7967_v11 = vld [vmem:[%s8753_s4 + $0x28] sm:$0xff]   ;;  %v7968_v12 = vld [vmem:[%s8753_s4 + $0x20] sm:$0xff]   ;;  %v7972_v18 = vld [vmem:[%s8754_s5 + $0x10] sm:$0xff]   ;;  %v5968_v26 = vshrl.u32 %v5967_v23, 7 }
 0x2e6   : > { %7395 = vmatprep.subr.bf16.mxu0 %v8012_v3  ;;  %7429 = vmatprep.mubr.msk.bf16.mxu1 %vm8013_vm2, %v8012_v3  ;;  %v5909_v13 = vld [vmem:[%s8751_s2] sm:$0xff]  ;;  %v7969_v15 = vld [vmem:[%s8754_s5 + $0x28] sm:$0xff]   ;;  %v5795_v28 = vld [vmem:[%s8753_s4 + $0x30] sm:$0x1] }
 0x2e7   : > { %v5910_v14 = vpack.c.bf16 %v5909_v13, %v5909_v13  ;;  %7418 = vmatpush3.bf16.msra.mxu1 %v7969_v15  ;;  %v7970_v16 = vld [vmem:[%s8754_s5 + $0x20] sm:$0xff]   ;;  %v7973_v19 = vld [vmem:[%s8754_s5 + $0x8] sm:$0xff]   ;;  %v5796_v30 = vunpack.c.l.bf16 %v5795_v28  ;;  %v5969_v31 = vsub.s32 0, %v5968_v26  ;;  %v5985_v44 = vld [vmem:[%s8754_s5 + $0x30] sm:$0x1] }
 0x2e8   : > { %7419 = vmatprep.subr.bf16.mxu1 %v8012_v3  ;;  %v7974_v20 = vld [vmem:[%s8754_s5] sm:$0xff]   ;;  %v5986_v45 = vunpack.c.l.bf16 %v5985_v44 }
 0x2e9   : > { %7396 = vmatpush3.bf16.msra.mxu0 %v7964_v4  ;;  %v5781_v9 = vld [vmem:[#allocation2] sm:$0xff]  ;;  %v5970_v35 = vrot.slane %v5796_v30, %v5969_v31 }
 0x2ea   : > { %7401 = vmatprep.subr.bf16.mxu0 %v8012_v3  ;;  %v5782_v10 = vpack.c.bf16 %v5781_v9, %v5781_v9  ;;  %v5991_v46 = vrot.slane %v5986_v45, %v5969_v31 }
 0x2eb   : > { %7420 = vmatpush3.bf16.msra.mxu1 %v7970_v16 }
 0x2ec   : > { %7398 = vmatmul.mubr.msk.bf16.vlgmr.msra.gmra.mxu0 %vm5775_vm1, %v5798_v6  ;;  %7421 = vmatprep.subr.bf16.mxu1 %v8012_v3 }
 0x2ed   : > { %7402 = vmatpush3.bf16.msra.mxu0 %v7965_v7  ;;  %7405 = vmatprep.mubr.msk.bf16.mxu0 %vm8013_vm2, %v8012_v3 }
 0x2ee   : > { %7403 = vmatprep.subr.bf16.mxu0 %v8012_v3 }
 0x2ef   : > { %7422 = vmatpush3.bf16.msra.mxu1 %v7971_v17 }
 0x2f0   : > { %7423 = vmatprep.subr.bf16.mxu1 %v8012_v3 }
 0x2f1   : > { %7404 = vmatpush3.bf16.msra.mxu0 %v7966_v8 }
 0x2f2   : > { %7409 = vmatprep.subr.bf16.mxu0 %v8012_v3 }
 0x2f3   : > { %7424 = vmatpush3.bf16.msra.mxu1 %v7972_v18 }
 0x2f4   : > { %7406 = vmatmul.mubr.msk.bf16.vlgmr.msra.gmra.mxu0 %vm5775_vm1, %v5782_v10  ;;  %7425 = vmatprep.subr.bf16.mxu1 %v8012_v3 }
 0x2f5   : > { %7410 = vmatpush3.bf16.msra.mxu0 %v7967_v11  ;;  %7413 = vmatprep.mubr.msk.bf16.mxu0 %vm8013_vm2, %v8012_v3 }
 0x2f6   : > { %7411 = vmatprep.subr.bf16.mxu0 %v8012_v3 }
 0x2f7   : > { %7426 = vmatpush3.bf16.msra.mxu1 %v7973_v19 }
 0x2f8   : > { %7427 = vmatprep.subr.bf16.mxu1 %v8012_v3 }
 0x2f9   : > { %7412 = vmatpush3.bf16.msra.mxu0 %v7968_v12 }
 0x2fb   : > { %7428 = vmatpush3.bf16.msra.mxu1 %v7974_v20 }
 0x2fc   : > { %7414 = vmatmul.mubr.msk.bf16.vlgmr.msra.gmra.mxu0 %vm5775_vm1, %v5910_v14 }
 0x3ac   : > { %v5848_v21 = vpop.f32.mrf.mxu0 }
 0x3ae   : > { %v7399_v22 = vpop.f32.mrf.mxu0 }
 0x3b0   : > { %v5851_v24 = vpop.f32.mrf.mxu0 }
 0x3b2   : > { %v7400_v25 = vpop.f32.mrf.mxu0 }
 0x3b4   : > { %v5903_v27 = vpop.f32.mrf.mxu0 }
 0x3b5   : > { %v5904_v34 = vadd.f32 %v5903_v27, %v5848_v21 }
 0x3b6   : > { %v7407_v29 = vpop.f32.mrf.mxu0 }
 0x3b8   : > { %v5906_v32 = vpop.f32.mrf.mxu0 }
 0x3ba   : > { %v7408_v33 = vpop.f32.mrf.mxu0 }
 0x3bc   : > { %v5960_v36 = vpop.f32.mrf.mxu0 }
 0x3bd   : > { %v5966_v37 = vadd.f32 %v5960_v36, %v5904_v34 }
 0x3be   : > { %v7415_v38 = vpop.f32.mrf.mxu0 }
 0x3bf   : > { %v5971_v39 = vadd.f32 %v5970_v35, %v5966_v37 }
 0x3c0   : > { %v5963_v40 = vpop.f32.mrf.mxu0 }
 0x3c1   : > { %v5972_v41 = vmax.f32 %v5971_v39, 0.0 }
 0x3c2   : > { %v7416_v42 = vpop.f32.mrf.mxu0 }
 0x3c3   : > { %v5987_v43 = vpack.c.bf16 %v5972_v41, %v5972_v41 }
 0x3c5   : > { %7430 = vmatmul.mubr.msk.bf16.vlgmr.msra.gmra.mxu1 %vm6028_vm3, %v5987_v43 }
 0x485   : > { %v6066_v47 = vpop.f32.mrf.mxu1 }
 0x486   : > { %v6067_v48 = vadd.f32 %v6066_v47, %v5991_v46 }
 0x487   : > { %v7431_v49 = vpop.f32.mrf.mxu1 }
 0x488   : > { %6072 = vst.msk [vmem:[#allocation3] sm:$0xff] %vm5775_vm1, %v6067_v48 }
 0x489   : > { %v6069_v50 = vpop.f32.mrf.mxu1 }
 0x48b   : > { %v7432_v51 = vpop.f32.mrf.mxu1 }
 0x48c PF: > { %p7437_p7 = scmp.eq.s32.totalorder %s8056_s22, 3  ;;  %s8014_s19 = smov [#allocation3]  }
 0x48d   : > { %s6080_s20 = sshll.u32 %s8014_s19, 4  ;;  %s6081_s20 = int_to_ptr.vmem [resolvable:$true] %s6080_s20 }
 0x48e   : > { %s7975_s23 = scalar_lea.vmem %s6081_s20, 128  ;;  %p7982_p11 = scmp.lt.s32.totalorder %s6081_s20, %s6081_s20 }
 0x48f   : > { %p7976_p8 = scmp.ne.s32.totalorder %s6081_s20, %s7975_s23  ;;  %p7983_p12 = scmp.lt.s32.totalorder %s7975_s23, %s7975_s23 }
 0x491   : > { %p7977_p9 = pnand %p7976_p8, %p7437_p7  ;;  %p7984_p13 = por %p7983_p12, %p7982_p11 }
 0x493   : > { %p7978_p10 = pneg %p7977_p9 }
 0x495   : > { %p7985_p0 = pnand %p7984_p13, %p7978_p10 }
 0x497   : > { %7988 = shalt.err (!%p7985_p0)
}
 0x498   : > { %7434 = dma.vmem_to_hbm [thread:$0]  (%p7437_p7), %s6081_s20, 128, %s8755_s6, [#allocation4]  }
 0x499   : > { %8004 = dma.done.wait (%p7437_p7), [#allocation4], 128  }
 0x49a   : > { %8006 = vsyncadd (%p7437_p7), [#allocation4], 4294967168 }
 0x49b PF: > { %s17_s21 = sadd.s32 1, %s8009_s21  }
 0x49c   : > { %p14_p1 = scmp.ge.s32.totalorder %s17_s21, 6  }
 0x49e   :  { %16 = sbr.rel (!%p14_p1) target bundleno = 1 (0x1), region = 82 }
 0x4a3   :  { %6093 = vsyncpa [#allocation4], 1 }
 0x4a4   :  { %6095 = vsyncpa [#allocation4 + $0x1], 1 }

</bundles_post_ra>
